<compile_context>
chip_gen: v7x
topology: tpu7x:2x2x1
jax: 0.10.0
libtpu: 0.0.40
codegen_flags: <defaults>
</compile_context>

<pallas_src>
import functools

import jax
import jax.numpy as jnp
from jax.experimental import pallas as pl
from jax.experimental.pallas import tpu as pltpu


# ----------------------------------------------------------------------------
# Kernel
# ----------------------------------------------------------------------------
def _multibox_kernel(xloc_ref, xconf_ref, loc_ref, label_ref, ce_ref, locsum_ref):
    """One (batch-block, anchor-tile): per-anchor CE + masked smooth-L1 partial."""
    label = label_ref[...]                                # (bb, ta) int32, anchors on lanes
    pos_f = (label > 0).astype(jnp.float32)
    clamped = jnp.maximum(label, 0)                       # label.clamp(min=0)

    # ---- cross entropy (reduction='none') -----------------------------------
    # Tiles arrive anchor-major (bb, ta, C).  Transpose once on the XLU so the
    # class reduce is a short sublane reduce and every downstream vreg is
    # lane-dense in anchors (pltpu.einshape("bac->bca", .) is an alternative).
    logits = jnp.swapaxes(xconf_ref[...].astype(jnp.float32), 1, 2)    # (bb, C, ta)
    m = jnp.max(logits, axis=1, keepdims=True)                         # (bb, 1, ta)
    lse = jnp.log(jnp.sum(jnp.exp(logits - m), axis=1)) + m[:, 0, :]   # (bb, ta)
    cls_iota = jax.lax.broadcasted_iota(jnp.int32, logits.shape, 1)    # (bb, C, ta)
    onehot = (cls_iota == clamped[:, None, :]).astype(jnp.float32)
    picked = jnp.sum(logits * onehot, axis=1)                          # (bb, ta)
    ce_ref[...] = lse - picked                                         # lane-dense store

    # ---- smooth L1 on positive anchors, summed (size_average=False) ---------
    xl = jnp.swapaxes(xloc_ref[...].astype(jnp.float32), 1, 2)         # (bb, 4, ta)
    gl = jnp.swapaxes(loc_ref[...].astype(jnp.float32), 1, 2)          # (bb, 4, ta)
    diff = xl - gl
    ad = jnp.abs(diff)
    sl1 = jnp.where(ad < 1.0, 0.5 * diff * diff, ad - 0.5)             # (bb, 4, ta)
    per_anchor = jnp.sum(sl1, axis=1)                                  # (bb, ta)
    locsum_ref[0, 0] = jnp.sum(per_anchor * pos_f, axis=(0, 1), keepdims=True)


# ----------------------------------------------------------------------------
# VMEM-budget-aware tiling
# ----------------------------------------------------------------------------
_DEFAULT_VMEM_BUDGET = 24 * 1024 * 1024   # fits the 32 MiB v6e/v7x scoped default


def _round_up(x, m):
    return -(-x // m) * m


def _vmem_bytes(bb, ta, C, in_itemsize):
    """Rough per-grid-step working set (double-buffered blocks + temporaries)."""
    lane = 128
    conf_blk = bb * ta * _round_up(C, lane) * in_itemsize     # C lanes pad to 128
    loc_blk = bb * ta * lane * in_itemsize                    # 4 coords pad to 128 lanes
    label_blk = _round_up(bb, 8) * ta * 4
    ce_blk = _round_up(bb, 8) * ta * 4
    pipelined = 2 * (conf_blk + 2 * loc_blk + label_blk + ce_blk)
    # in-kernel f32 temporaries (transposed tiles + elementwise intermediates)
    tmp = bb * _round_up(C, 8) * ta * 4 * 3 + bb * 8 * ta * 4 * 4
    return pipelined + tmp


def _pick_tiles(B, A, C, in_itemsize, budget):
    # Batch block must be a multiple of 8 (sublane rule for the (bb, ta)
    # label/ce blocks) or equal to the full batch.
    # TODO(synk): batches > 8 that are not multiples of 8 fall back to bb=B.
    bb = 8 if (B % 8 == 0) else B
    ta = 128
    for cand in (2048, 1024, 512, 256, 128):
        if _vmem_bytes(bb, cand, C, in_itemsize) <= budget:
            ta = cand
            break
    ta = min(ta, max(128, _round_up(A, 128)))   # don't over-pad small anchor counts
    return bb, ta


# ----------------------------------------------------------------------------
# Wrapper
# ----------------------------------------------------------------------------
@functools.partial(jax.jit, static_argnames=("k", "ta", "vmem_budget"))
def multibox_loss(xloc, xconf, loc, label, k=3, ta=None,
                  vmem_budget=_DEFAULT_VMEM_BUDGET):
    B, A, C = xconf.shape
    in_itemsize = jnp.dtype(xconf.dtype).itemsize
    bb, ta_auto = _pick_tiles(B, A, C, in_itemsize, vmem_budget)
    if ta is None:
        ta = ta_auto
    assert ta % 128 == 0, "anchor tile must be lane-aligned (multiple of 128)"
    assert B % bb == 0

    # Pad anchors so the grid tiles evenly with lane-dense blocks.  Padded
    # anchors get label=-1 (never positive -> zero loc contribution); their CE
    # is sliced off before mining.
    A_pad = _round_up(A, ta)
    if A_pad != A:
        pad = A_pad - A
        xloc = jnp.pad(xloc, ((0, 0), (0, pad), (0, 0)))
        loc = jnp.pad(loc, ((0, 0), (0, pad), (0, 0)))
        xconf = jnp.pad(xconf, ((0, 0), (0, pad), (0, 0)))
        label_p = jnp.pad(label, ((0, 0), (0, pad)), constant_values=-1)
    else:
        label_p = label

    nb, nj = B // bb, A_pad // ta
    est = _vmem_bytes(bb, ta, C, in_itemsize)
    vmem_limit = (32 * 1024 * 1024) if est > 12 * 1024 * 1024 else None

    ce_full, loc_partials = pl.pallas_call(
        _multibox_kernel,
        out_shape=(jax.ShapeDtypeStruct((B, A_pad), jnp.float32),
                   jax.ShapeDtypeStruct((nb, nj, 1, 1), jnp.float32)),
        grid=(nb, nj),
        in_specs=[
            pl.BlockSpec((bb, ta, 4), lambda i, j: (i, j, 0)),   # xloc (native layout)
            pl.BlockSpec((bb, ta, C), lambda i, j: (i, j, 0)),   # xconf (native layout)
            pl.BlockSpec((bb, ta, 4), lambda i, j: (i, j, 0)),   # loc
            pl.BlockSpec((bb, ta), lambda i, j: (i, j)),         # label
        ],
        out_specs=(
            pl.BlockSpec((bb, ta), lambda i, j: (i, j)),          # per-anchor CE
            pl.BlockSpec((1, 1, 1, 1), lambda i, j: (i, j, 0, 0)),  # loc partial sums
        ),
        compiler_params=pltpu.CompilerParams(
            dimension_semantics=("parallel", "parallel"),   # fully independent tiles
            vmem_limit_bytes=vmem_limit),
    )(xloc, xconf, loc, label_p)

    ce = ce_full[:, :A]                       # drop padded anchors before mining
    loc_sum = jnp.sum(loc_partials)

    pos = label > 0
    neg = label == 0
    num_pos = jnp.sum(pos.astype(jnp.int32), axis=1, keepdims=True)
    n_pos_f = jnp.sum(num_pos).astype(jnp.float32)

    # ---- hard negative mining (plain JAX glue) -------------------------------
    # TODO(synk): per-row sort has no Pallas TPU primitive; ranking stays in
    # XLA.  Single stable argsort + inverse-permutation scatter is exactly
    # equivalent to the original argsort(argsort(.)).  A top_k + threshold
    # variant would be cheaper but can change tie handling at the cutoff.
    values = jax.lax.stop_gradient(ce) * (-neg.astype(jnp.float32))
    order = jnp.argsort(values, axis=1)                               # (B, A)
    row_idx = jnp.arange(B, dtype=jnp.int32)[:, None]
    ranks_src = jnp.broadcast_to(jnp.arange(A, dtype=jnp.int32)[None, :], (B, A))
    rank = jnp.zeros((B, A), jnp.int32).at[row_idx, order].set(ranks_src)
    hard_neg = rank < num_pos * k
    mask = jnp.logical_or(pos, hard_neg).astype(jnp.float32)
    conf_sum = jnp.sum(ce * mask)             # trivial fused masked reduction

    n = n_pos_f + 0.001
    return loc_sum / n, conf_sum / n


# ----------------------------------------------------------------------------
# Pure-JAX reference (verification)
# ----------------------------------------------------------------------------
def _reference_loss(xloc, xconf, loc, label, k=3):
    xloc = xloc.astype(jnp.float32)
    xconf = xconf.astype(jnp.float32)
    loc = loc.astype(jnp.float32)
    pos = label > 0
    neg = label == 0
    clamped = jnp.maximum(label, 0)
    diff = xloc - loc
    ad = jnp.abs(diff)
    sl1 = jnp.where(ad < 1.0, 0.5 * diff * diff, ad - 0.5)
    loc_loss = jnp.sum(jnp.sum(sl1, axis=-1) * pos.astype(jnp.float32))
    ce = (jax.nn.logsumexp(xconf, axis=-1)
          - jnp.take_along_axis(xconf, clamped[..., None], axis=-1)[..., 0])
    values = ce * (-neg.astype(jnp.float32))
    rank = jnp.argsort(jnp.argsort(values, axis=1), axis=1)
    num_pos = jnp.sum(pos.astype(jnp.int32), axis=1, keepdims=True)
    hard_neg = rank < num_pos * k
    conf_loss = jnp.sum(ce * jnp.logical_or(pos, hard_neg).astype(jnp.float32))
    n = jnp.sum(pos.astype(jnp.float32)) + 0.001
    return loc_loss / n, conf_loss / n


if __name__ == "__main__":
    key = jax.random.PRNGKey(0)
    B, A, C = 2, 600, 8   # A deliberately NOT a multiple of 128 -> exercises padding
    k1, k2, k3, k4, k5 = jax.random.split(key, 5)

    xloc = jax.random.normal(k1, (B, A, 4), dtype=jnp.float32)
    xconf = jax.random.normal(k2, (B, A, C), dtype=jnp.float32)
    loc = jax.random.normal(k3, (B, A, 4), dtype=jnp.float32)

    # labels: ~5% ignore (-1), ~85% background (0), ~10% positive (1..C-1)
    u = jax.random.uniform(k4, (B, A))
    cls = jax.random.randint(k5, (B, A), 1, C, dtype=jnp.int32)
    label = jnp.where(u < 0.05, -1, jnp.where(u < 0.90, 0, cls)).astype(jnp.int32)

    # f32 path with a small explicit tile -> multi-tile grid + anchor padding.
    loc_loss, conf_loss = multibox_loss(xloc, xconf, loc, label, ta=256)
    jax.block_until_ready((loc_loss, conf_loss))
    ref_loc, ref_conf = _reference_loss(xloc, xconf, loc, label)
    assert jnp.allclose(loc_loss, ref_loc, rtol=1e-4, atol=1e-4), (loc_loss, ref_loc)
    assert jnp.allclose(conf_loss, ref_conf, rtol=1e-4, atol=1e-4), (conf_loss, ref_conf)

    # bf16 inputs (halves the dominant HBM traffic; kernel upcasts to f32).
    xloc_h, xconf_h, loc_h = (x.astype(jnp.bfloat16) for x in (xloc, xconf, loc))
    ll_h, cl_h = multibox_loss(xloc_h, xconf_h, loc_h, label)
    jax.block_until_ready((ll_h, cl_h))
    ref_loc_h, ref_conf_h = _reference_loss(xloc_h, xconf_h, loc_h, label)
    assert jnp.allclose(ll_h, ref_loc_h, rtol=1e-3, atol=1e-3), (ll_h, ref_loc_h)
    assert jnp.allclose(cl_h, ref_conf_h, rtol=1e-3, atol=1e-3), (cl_h, ref_conf_h)

    print("KERNEL_OK")
</pallas_src>

<mosaic_0001>
module attributes {stable_mosaic.version = 11 : i64} {
  func.func @_multibox_kernel(%arg0: i32, %arg1: i32, %arg2: memref<2x256x4xf32, #tpu.memory_space<vmem>>, %arg3: memref<2x256x8xf32, #tpu.memory_space<vmem>>, %arg4: memref<2x256x4xf32, #tpu.memory_space<vmem>>, %arg5: memref<2x256xi32, #tpu.memory_space<vmem>>, %arg6: memref<2x256xf32, #tpu.memory_space<vmem>>, %arg7: memref<1x1x1x1xf32, #tpu.memory_space<vmem>>) attributes {dimension_semantics = [#tpu.dimension_semantics<parallel>, #tpu.dimension_semantics<parallel>], iteration_bounds = array<i64: 1, 3>, scalar_prefetch = 0 : i64, scratch_operands = 0 : i64, tpu.core_type = #tpu.core_type<tc>, window_params = [{transform_indices = @transform_0, window_bounds = array<i64: 2, 256, 4>}, {transform_indices = @transform_1, window_bounds = array<i64: 2, 256, 8>}, {transform_indices = @transform_2, window_bounds = array<i64: 2, 256, 4>}, {transform_indices = @transform_3, window_bounds = array<i64: 2, 256>}, {transform_indices = @transform_4, window_bounds = array<i64: 2, 256>}, {transform_indices = @transform_5, window_bounds = array<i64: 1, 1, 1, 1>}]} {
    %c0 = arith.constant 0 : index
    %c0_0 = arith.constant 0 : index
    %0 = vector.load %arg5[%c0, %c0_0] : memref<2x256xi32, #tpu.memory_space<vmem>>, vector<2x256xi32>
    %c0_i32 = arith.constant 0 : i32
    %1 = vector.broadcast %c0_i32 : i32 to vector<2x256xi32>
    %2 = arith.cmpi sgt, %0, %1 : vector<2x256xi32>
    %3 = arith.extui %2 : vector<2x256xi1> to vector<2x256xi32>
    %4 = arith.sitofp %3 : vector<2x256xi32> to vector<2x256xf32>
    %c0_i32_1 = arith.constant 0 : i32
    %5 = vector.broadcast %c0_i32_1 : i32 to vector<2x256xi32>
    %6 = arith.maxsi %0, %5 : vector<2x256xi32>
    %c0_2 = arith.constant 0 : index
    %c0_3 = arith.constant 0 : index
    %c0_4 = arith.constant 0 : index
    %7 = vector.load %arg3[%c0_2, %c0_3, %c0_4] : memref<2x256x8xf32, #tpu.memory_space<vmem>>, vector<2x256x8xf32>
    %8 = tpu.transpose %7, [0, 2, 1] : vector<2x256x8xf32> -> vector<2x8x256xf32>
    %cst = arith.constant dense<0xFF800000> : vector<2x256xf32>
    %9 = vector.multi_reduction <maximumf>, %8, %cst [1] : vector<2x8x256xf32> to vector<2x256xf32>
    %10 = vector.shape_cast %9 : vector<2x256xf32> to vector<2x1x256xf32>
    %11 = vector.broadcast %10 : vector<2x1x256xf32> to vector<2x8x256xf32>
    %12 = arith.subf %8, %11 : vector<2x8x256xf32>
    %13 = math.exp %12 : vector<2x8x256xf32>
    %cst_5 = arith.constant dense<0.000000e+00> : vector<2x256xf32>
    %14 = vector.multi_reduction <add>, %13, %cst_5 [1] : vector<2x8x256xf32> to vector<2x256xf32>
    %15 = math.log %14 : vector<2x256xf32>
    %16 = vector.shape_cast %10 : vector<2x1x256xf32> to vector<2x256xf32>
    %17 = arith.addf %15, %16 : vector<2x256xf32>
    %18 = tpu.iota {dimensions = array<i32: 1>} : vector<2x8x256xi32>
    %19 = vector.shape_cast %6 : vector<2x256xi32> to vector<2x1x256xi32>
    %20 = vector.broadcast %19 : vector<2x1x256xi32> to vector<2x8x256xi32>
    %21 = arith.cmpi eq, %18, %20 : vector<2x8x256xi32>
    %22 = arith.extui %21 : vector<2x8x256xi1> to vector<2x8x256xi32>
    %23 = arith.sitofp %22 : vector<2x8x256xi32> to vector<2x8x256xf32>
    %24 = arith.mulf %8, %23 : vector<2x8x256xf32>
    %cst_6 = arith.constant dense<0.000000e+00> : vector<2x256xf32>
    %25 = vector.multi_reduction <add>, %24, %cst_6 [1] : vector<2x8x256xf32> to vector<2x256xf32>
    %26 = arith.subf %17, %25 : vector<2x256xf32>
    %c0_7 = arith.constant 0 : index
    %c0_8 = arith.constant 0 : index
    %27 = vector.load %arg6[%c0_7, %c0_8] : memref<2x256xf32, #tpu.memory_space<vmem>>, vector<2x256xf32>
    tpu.vector_store %arg6[%c0_7, %c0_8], %26 {strides = array<i32>} : memref<2x256xf32, #tpu.memory_space<vmem>>, vector<2x256xf32>,
    %c0_9 = arith.constant 0 : index
    %c0_10 = arith.constant 0 : index
    %c0_11 = arith.constant 0 : index
    %28 = vector.load %arg2[%c0_9, %c0_10, %c0_11] : memref<2x256x4xf32, #tpu.memory_space<vmem>>, vector<2x256x4xf32>
    %29 = tpu.transpose %28, [0, 2, 1] : vector<2x256x4xf32> -> vector<2x4x256xf32>
    %c0_12 = arith.constant 0 : index
    %c0_13 = arith.constant 0 : index
    %c0_14 = arith.constant 0 : index
    %30 = vector.load %arg4[%c0_12, %c0_13, %c0_14] : memref<2x256x4xf32, #tpu.memory_space<vmem>>, vector<2x256x4xf32>
    %31 = tpu.transpose %30, [0, 2, 1] : vector<2x256x4xf32> -> vector<2x4x256xf32>
    %32 = arith.subf %29, %31 : vector<2x4x256xf32>
    %33 = math.absf %32 : vector<2x4x256xf32>
    %cst_15 = arith.constant 1.000000e+00 : f32
    %34 = vector.broadcast %cst_15 : f32 to vector<2x4x256xf32>
    %35 = arith.cmpf olt, %33, %34 : vector<2x4x256xf32>
    %cst_16 = arith.constant 5.000000e-01 : f32
    %36 = vector.broadcast %cst_16 : f32 to vector<2x4x256xf32>
    %37 = arith.mulf %36, %32 : vector<2x4x256xf32>
    %38 = arith.mulf %37, %32 : vector<2x4x256xf32>
    %cst_17 = arith.constant 5.000000e-01 : f32
    %39 = vector.broadcast %cst_17 : f32 to vector<2x4x256xf32>
    %40 = arith.subf %33, %39 : vector<2x4x256xf32>
    %41 = arith.select %35, %38, %40 : vector<2x4x256xi1>, vector<2x4x256xf32>
    %cst_18 = arith.constant dense<0.000000e+00> : vector<2x256xf32>
    %42 = vector.multi_reduction <add>, %41, %cst_18 [1] : vector<2x4x256xf32> to vector<2x256xf32>
    %43 = arith.mulf %42, %4 : vector<2x256xf32>
    %44 = vector.shape_cast %43 : vector<2x256xf32> to vector<1x2x256xf32>
    %cst_19 = arith.constant dense<0.000000e+00> : vector<1xf32>
    %45 = vector.multi_reduction <add>, %44, %cst_19 [1, 2] : vector<1x2x256xf32> to vector<1xf32>
    %46 = vector.shape_cast %45 : vector<1xf32> to vector<1x1x1xf32>
    %47 = vector.extract %46[0, 0, 0] : f32 from vector<1x1x1xf32>
    %48 = vector.broadcast %47 : f32 to vector<1x1xf32>
    %c0_20 = arith.constant 0 : index
    %c0_21 = arith.constant 0 : index
    %c0_22 = arith.constant 0 : index
    %c0_23 = arith.constant 0 : index
    %49 = vector.load %arg7[%c0_20, %c0_21, %c0_22, %c0_23] : memref<1x1x1x1xf32, #tpu.memory_space<vmem>>, vector<1x1x1x1xf32>
    %50 = vector.shape_cast %49 : vector<1x1x1x1xf32> to vector<1x1xf32>
    %51 = vector.shape_cast %48 : vector<1x1xf32> to vector<1x1x1x1xf32>
    tpu.vector_store %arg7[%c0_20, %c0_21, %c0_22, %c0_23], %51 {strides = array<i32>} : memref<1x1x1x1xf32, #tpu.memory_space<vmem>>, vector<1x1x1x1xf32>,
    return
  }
  func.func @transform_0(%arg0: i32, %arg1: i32) -> (i32, i32, i32) {
    %c0_i32 = arith.constant 0 : i32
    %c0_i32_0 = arith.constant 0 : i32
    return %arg0, %arg1, %c0_i32 : i32, i32, i32
  }
  func.func @transform_1(%arg0: i32, %arg1: i32) -> (i32, i32, i32) {
    %c0_i32 = arith.constant 0 : i32
    %c0_i32_0 = arith.constant 0 : i32
    return %arg0, %arg1, %c0_i32 : i32, i32, i32
  }
  func.func @transform_2(%arg0: i32, %arg1: i32) -> (i32, i32, i32) {
    %c0_i32 = arith.constant 0 : i32
    %c0_i32_0 = arith.constant 0 : i32
    return %arg0, %arg1, %c0_i32 : i32, i32, i32
  }
  func.func @transform_3(%arg0: i32, %arg1: i32) -> (i32, i32) {
    %c0_i32 = arith.constant 0 : i32
    return %arg0, %arg1 : i32, i32
  }
  func.func @transform_4(%arg0: i32, %arg1: i32) -> (i32, i32) {
    %c0_i32 = arith.constant 0 : i32
    return %arg0, %arg1 : i32, i32
  }
  func.func @transform_5(%arg0: i32, %arg1: i32) -> (i32, i32, i32, i32) {
    %c0_i32 = arith.constant 0 : i32
    %c0_i32_0 = arith.constant 0 : i32
    %c0_i32_1 = arith.constant 0 : i32
    return %arg0, %arg1, %c0_i32, %c0_i32_0 : i32, i32, i32, i32
  }
}

</mosaic_0001>

<bundles_post_ra>
// kernel: multibox_loss.1
= control target key start
LH: loop header
LB: loop body
LE: loop exit
PB: predicated region body
PF: predicated region fallthrough
CT: control target
= control target key end

     0   :  { %s2446_s18 = smov 0   ;;  %s2448_s19 = smov 0   ;;  %s3221_s0 = inlined_call_operand.vmem [shape: f32[2,768,4], index: 0, kind: input, shape index: {}]   ;;  %s3222_s1 = inlined_call_operand.vmem [shape: f32[2,768,8], index: 1, kind: input, shape index: {}]   ;;  %s3223_s2 = inlined_call_operand.vmem [shape: f32[2,768,4], index: 2, kind: input, shape index: {}]   ;;  %s3224_s3 = inlined_call_operand.vmem [shape: s32[2,768], index: 3, kind: input, shape index: {}]   ;;  %s3225_s4 = inlined_call_operand.vmem [shape: f32[2,768], index: 4, kind: output, shape index: {0}]   ;;  %s3226_s5 = inlined_call_operand.vmem [shape: f32[1,3,1,1], index: 5, kind: output, shape index: {1}]  }
   0x1   :  { %s2450_s20 = smov 0   ;;  %s2452_s21 = smov 0  }
   0x2   :  { %s2454_s22 = smov 0  }
   0x3 LB: > { %s25_s23 = sadd.s32 1, %s2407_s21  ;;  %p44_p1 = scmp.ne.s32.totalorder %s2399_s19, %s2395_s18  ;;  %s2411_s22 = sphi %s2454_s22, %s16_s22   ;;  %s2407_s21 = sphi %s2452_s21, %s3231_s21   ;;  %s2403_s20 = sphi %s2450_s20, %s3230_s20   ;;  %s2399_s19 = sphi %s2448_s19, %s3229_s19   ;;  %s2395_s18 = sphi %s2446_s18, %s3228_s18  }
   0x4   : > { %p26_p0 = scmp.ge.s32.totalorder %s25_s23, 3  ;;  %p45_p2 = scmp.eq.s32.totalorder %s2411_s22, 0 }
   0x5   : > { %s37_s26 = sadd.s32 1, %s2399_s19  ;;  %p2280_p5 = scmp.ge.s32.totalorder %s2411_s22, 3 }
   0x6   : > { %s3233_s23 = smov (%p26_p0, %s25_s23), 0  ;;  %p2477_p3 = por %p45_p2, %p44_p1 }
   0x7   : > { %s33_s25 = ssub.s32 %s2407_s21, %s3233_s23  ;;  %210 = sbr.rel (%p2280_p5) target bundleno = 122 (0x7a), region = 16 }
   0x8   : > { %p35_p4 = scmp.eq.s32.totalorder %s33_s25, 0 }
   0xa   : > { %s2485_s27 = scalar_select %p35_p4, %s2399_s19, %s37_s26  }
   0xe   : > { %213 = sbr.rel (!%p2477_p3) target bundleno = 50 (0x32), region = 20  ;;  %s215_s28 = sand.u32 (%p2477_p3), 1, %s2399_s19  }
   0xf   : > { %s2309_s29 = sshll.u32 (%p2477_p3), %s2407_s21, 8  ;;  %s2281_s30 = sshll.u32 (%p2477_p3), %s215_s28, 9 }
  0x10   : > { %s2495_s8 = scalar_lea.vmem (%p2477_p3), %s3221_s0, %s2309_s29  ;;  %s2500_s9 = scalar_lea.vmem (%p2477_p3), [#allocation2], %s2281_s30 }
  0x11   : > { %v377_v0 = vld [vmem:[%s2495_s8] sm:$0xff] (%p2477_p3)  ;;  %v379_v1 = vld [vmem:[%s2495_s8 + $0x8] sm:$0xff] (%p2477_p3)  ;;  %v381_v2 = vld [vmem:[%s2495_s8 + $0x10] sm:$0xff] (%p2477_p3) }
  0x12   : > { %378 = vst [vmem:[%s2500_s9] sm:$0xff] (%p2477_p3), %v377_v0  ;;  %380 = vst [vmem:[%s2500_s9 + $0x8] sm:$0xff] (%p2477_p3), %v379_v1  ;;  %v383_v3 = vld [vmem:[%s2495_s8 + $0x18] sm:$0xff] (%p2477_p3)  ;;  %v385_v4 = vld [vmem:[%s2495_s8 + $0x20] sm:$0xff] (%p2477_p3) }
  0x13   : > { %382 = vst [vmem:[%s2500_s9 + $0x10] sm:$0xff] (%p2477_p3), %v381_v2  ;;  %v387_v5 = vld [vmem:[%s2495_s8 + $0x28] sm:$0xff] (%p2477_p3)  ;;  %384 = vst [vmem:[%s2500_s9 + $0x18] sm:$0xff] (%p2477_p3), %v383_v3  ;;  %v389_v6 = vld [vmem:[%s2495_s8 + $0x30] sm:$0xff] (%p2477_p3) }
  0x14   : > { %386 = vst [vmem:[%s2500_s9 + $0x20] sm:$0xff] (%p2477_p3), %v385_v4  ;;  %388 = vst [vmem:[%s2500_s9 + $0x28] sm:$0xff] (%p2477_p3), %v387_v5  ;;  %v391_v7 = vld [vmem:[%s2495_s8 + $0x38] sm:$0xff] (%p2477_p3)  ;;  %v393_v8 = vld [vmem:[%s2495_s8 + $0x40] sm:$0xff] (%p2477_p3) }
  0x15   : > { %390 = vst [vmem:[%s2500_s9 + $0x30] sm:$0xff] %v389_v6  ;;  %392 = vst [vmem:[%s2500_s9 + $0x38] sm:$0xff] %v391_v7  ;;  %v395_v9 = vld [vmem:[%s2495_s8 + $0x48] sm:$0xff]  ;;  %v397_v10 = vld [vmem:[%s2495_s8 + $0x50] sm:$0xff] }
  0x16   : > { %394 = vst [vmem:[%s2500_s9 + $0x40] sm:$0xff] %v393_v8  ;;  %v399_v11 = vld [vmem:[%s2495_s8 + $0x58] sm:$0xff]  ;;  %396 = vst [vmem:[%s2500_s9 + $0x48] sm:$0xff] %v395_v9  ;;  %v401_v12 = vld [vmem:[%s2495_s8 + $0x60] sm:$0xff] }
  0x17   : > { %398 = vst [vmem:[%s2500_s9 + $0x50] sm:$0xff] %v397_v10  ;;  %400 = vst [vmem:[%s2500_s9 + $0x58] sm:$0xff] %v399_v11  ;;  %v403_v13 = vld [vmem:[%s2495_s8 + $0x68] sm:$0xff]  ;;  %v405_v14 = vld [vmem:[%s2495_s8 + $0x70] sm:$0xff] }
  0x18   : > { %402 = vst [vmem:[%s2500_s9 + $0x60] sm:$0xff] %v401_v12  ;;  %404 = vst [vmem:[%s2500_s9 + $0x68] sm:$0xff] %v403_v13  ;;  %v407_v15 = vld [vmem:[%s2495_s8 + $0x78] sm:$0xff]  ;;  %v409_v16 = vld [vmem:[%s2495_s8 + $0x80] sm:$0xff] }
  0x19   : > { %406 = vst [vmem:[%s2500_s9 + $0x70] sm:$0xff] %v405_v14  ;;  %v411_v17 = vld [vmem:[%s2495_s8 + $0x88] sm:$0xff]  ;;  %408 = vst [vmem:[%s2500_s9 + $0x78] sm:$0xff] %v407_v15  ;;  %v413_v18 = vld [vmem:[%s2495_s8 + $0x90] sm:$0xff] }
  0x1a   : > { %410 = vst [vmem:[%s2500_s9 + $0x80] sm:$0xff] %v409_v16  ;;  %412 = vst [vmem:[%s2500_s9 + $0x88] sm:$0xff] %v411_v17  ;;  %v415_v19 = vld [vmem:[%s2495_s8 + $0x98] sm:$0xff]  ;;  %v417_v20 = vld [vmem:[%s2495_s8 + $0xa0] sm:$0xff] }
  0x1b   : > { %414 = vst [vmem:[%s2500_s9 + $0x90] sm:$0xff] %v413_v18  ;;  %416 = vst [vmem:[%s2500_s9 + $0x98] sm:$0xff] %v415_v19  ;;  %v419_v21 = vld [vmem:[%s2495_s8 + $0xa8] sm:$0xff]  ;;  %v421_v22 = vld [vmem:[%s2495_s8 + $0xb0] sm:$0xff] }
  0x1c   : > { %418 = vst [vmem:[%s2500_s9 + $0xa0] sm:$0xff] %v417_v20  ;;  %v423_v23 = vld [vmem:[%s2495_s8 + $0xb8] sm:$0xff]  ;;  %420 = vst [vmem:[%s2500_s9 + $0xa8] sm:$0xff] %v419_v21  ;;  %v425_v24 = vld [vmem:[%s2495_s8 + $0xc0] sm:$0xff] }
  0x1d   : > { %422 = vst [vmem:[%s2500_s9 + $0xb0] sm:$0xff] %v421_v22  ;;  %424 = vst [vmem:[%s2500_s9 + $0xb8] sm:$0xff] %v423_v23  ;;  %v427_v25 = vld [vmem:[%s2495_s8 + $0xc8] sm:$0xff]  ;;  %v429_v26 = vld [vmem:[%s2495_s8 + $0xd0] sm:$0xff] }
  0x1e   : > { %426 = vst [vmem:[%s2500_s9 + $0xc0] sm:$0xff] %v425_v24  ;;  %428 = vst [vmem:[%s2500_s9 + $0xc8] sm:$0xff] %v427_v25  ;;  %v431_v27 = vld [vmem:[%s2495_s8 + $0xd8] sm:$0xff]  ;;  %v433_v28 = vld [vmem:[%s2495_s8 + $0xe0] sm:$0xff] }
  0x1f   : > { %430 = vst [vmem:[%s2500_s9 + $0xd0] sm:$0xff] %v429_v26  ;;  %v435_v29 = vld [vmem:[%s2495_s8 + $0xe8] sm:$0xff]  ;;  %432 = vst [vmem:[%s2500_s9 + $0xd8] sm:$0xff] %v431_v27  ;;  %v437_v30 = vld [vmem:[%s2495_s8 + $0xf0] sm:$0xff] }
  0x20   : > { %434 = vst [vmem:[%s2500_s9 + $0xe0] sm:$0xff] %v433_v28  ;;  %436 = vst [vmem:[%s2500_s9 + $0xe8] sm:$0xff] %v435_v29  ;;  %v439_v31 = vld [vmem:[%s2495_s8 + $0xf8] sm:$0xff]  ;;  %v441_v32 = vld [vmem:[%s2495_s8 + $0x300] sm:$0xff] }
  0x21   : > { %438 = vst [vmem:[%s2500_s9 + $0xf0] sm:$0xff] %v437_v30  ;;  %440 = vst [vmem:[%s2500_s9 + $0xf8] sm:$0xff] %v439_v31  ;;  %v443_v33 = vld [vmem:[%s2495_s8 + $0x308] sm:$0xff]  ;;  %v445_v34 = vld [vmem:[%s2495_s8 + $0x310] sm:$0xff] }
  0x22   : > { %442 = vst [vmem:[%s2500_s9 + $0x100] sm:$0xff] %v441_v32  ;;  %v447_v35 = vld [vmem:[%s2495_s8 + $0x318] sm:$0xff]  ;;  %444 = vst [vmem:[%s2500_s9 + $0x108] sm:$0xff] %v443_v33  ;;  %v449_v36 = vld [vmem:[%s2495_s8 + $0x320] sm:$0xff] }
  0x23   : > { %446 = vst [vmem:[%s2500_s9 + $0x110] sm:$0xff] %v445_v34  ;;  %448 = vst [vmem:[%s2500_s9 + $0x118] sm:$0xff] %v447_v35  ;;  %v451_v37 = vld [vmem:[%s2495_s8 + $0x328] sm:$0xff]  ;;  %v453_v38 = vld [vmem:[%s2495_s8 + $0x330] sm:$0xff] }
  0x24   : > { %450 = vst [vmem:[%s2500_s9 + $0x120] sm:$0xff] %v449_v36  ;;  %452 = vst [vmem:[%s2500_s9 + $0x128] sm:$0xff] %v451_v37  ;;  %v455_v39 = vld [vmem:[%s2495_s8 + $0x338] sm:$0xff]  ;;  %v457_v40 = vld [vmem:[%s2495_s8 + $0x340] sm:$0xff] }
  0x25   : > { %454 = vst [vmem:[%s2500_s9 + $0x130] sm:$0xff] %v453_v38  ;;  %v459_v41 = vld [vmem:[%s2495_s8 + $0x348] sm:$0xff]  ;;  %456 = vst [vmem:[%s2500_s9 + $0x138] sm:$0xff] %v455_v39  ;;  %v461_v42 = vld [vmem:[%s2495_s8 + $0x350] sm:$0xff] }
  0x26   : > { %458 = vst [vmem:[%s2500_s9 + $0x140] sm:$0xff] %v457_v40  ;;  %460 = vst [vmem:[%s2500_s9 + $0x148] sm:$0xff] %v459_v41  ;;  %v463_v43 = vld [vmem:[%s2495_s8 + $0x358] sm:$0xff]  ;;  %v465_v44 = vld [vmem:[%s2495_s8 + $0x360] sm:$0xff] }
  0x27   : > { %462 = vst [vmem:[%s2500_s9 + $0x150] sm:$0xff] %v461_v42  ;;  %464 = vst [vmem:[%s2500_s9 + $0x158] sm:$0xff] %v463_v43  ;;  %v467_v45 = vld [vmem:[%s2495_s8 + $0x368] sm:$0xff]  ;;  %v469_v46 = vld [vmem:[%s2495_s8 + $0x370] sm:$0xff] }
  0x28   : > { %466 = vst [vmem:[%s2500_s9 + $0x160] sm:$0xff] %v465_v44  ;;  %v471_v47 = vld [vmem:[%s2495_s8 + $0x378] sm:$0xff]  ;;  %468 = vst [vmem:[%s2500_s9 + $0x168] sm:$0xff] %v467_v45  ;;  %v473_v48 = vld [vmem:[%s2495_s8 + $0x380] sm:$0xff] }
  0x29   : > { %470 = vst [vmem:[%s2500_s9 + $0x170] sm:$0xff] %v469_v46  ;;  %472 = vst [vmem:[%s2500_s9 + $0x178] sm:$0xff] %v471_v47  ;;  %v475_v49 = vld [vmem:[%s2495_s8 + $0x388] sm:$0xff]  ;;  %v477_v50 = vld [vmem:[%s2495_s8 + $0x390] sm:$0xff] }
  0x2a   : > { %474 = vst [vmem:[%s2500_s9 + $0x180] sm:$0xff] %v473_v48  ;;  %476 = vst [vmem:[%s2500_s9 + $0x188] sm:$0xff] %v475_v49  ;;  %v479_v51 = vld [vmem:[%s2495_s8 + $0x398] sm:$0xff]  ;;  %v481_v52 = vld [vmem:[%s2495_s8 + $0x3a0] sm:$0xff] }
  0x2b   : > { %478 = vst [vmem:[%s2500_s9 + $0x190] sm:$0xff] %v477_v50  ;;  %v483_v53 = vld [vmem:[%s2495_s8 + $0x3a8] sm:$0xff]  ;;  %480 = vst [vmem:[%s2500_s9 + $0x198] sm:$0xff] %v479_v51  ;;  %v485_v54 = vld [vmem:[%s2495_s8 + $0x3b0] sm:$0xff] }
  0x2c   : > { %482 = vst [vmem:[%s2500_s9 + $0x1a0] sm:$0xff] %v481_v52  ;;  %484 = vst [vmem:[%s2500_s9 + $0x1a8] sm:$0xff] %v483_v53  ;;  %v487_v55 = vld [vmem:[%s2495_s8 + $0x3b8] sm:$0xff]  ;;  %v489_v56 = vld [vmem:[%s2495_s8 + $0x3c0] sm:$0xff] }
  0x2d   : > { %486 = vst [vmem:[%s2500_s9 + $0x1b0] sm:$0xff] %v485_v54  ;;  %488 = vst [vmem:[%s2500_s9 + $0x1b8] sm:$0xff] %v487_v55  ;;  %v491_v57 = vld [vmem:[%s2495_s8 + $0x3c8] sm:$0xff]  ;;  %v493_v58 = vld [vmem:[%s2495_s8 + $0x3d0] sm:$0xff] }
  0x2e   : > { %490 = vst [vmem:[%s2500_s9 + $0x1c0] sm:$0xff] %v489_v56  ;;  %v495_v59 = vld [vmem:[%s2495_s8 + $0x3d8] sm:$0xff]  ;;  %492 = vst [vmem:[%s2500_s9 + $0x1c8] sm:$0xff] %v491_v57  ;;  %v497_v60 = vld [vmem:[%s2495_s8 + $0x3e0] sm:$0xff] }
  0x2f   : > { %494 = vst [vmem:[%s2500_s9 + $0x1d0] sm:$0xff] %v493_v58  ;;  %496 = vst [vmem:[%s2500_s9 + $0x1d8] sm:$0xff] %v495_v59  ;;  %v499_v61 = vld [vmem:[%s2495_s8 + $0x3e8] sm:$0xff]  ;;  %v501_v62 = vld [vmem:[%s2495_s8 + $0x3f0] sm:$0xff] }
  0x30   : > { %498 = vst [vmem:[%s2500_s9 + $0x1e0] sm:$0xff] %v497_v60  ;;  %500 = vst [vmem:[%s2500_s9 + $0x1e8] sm:$0xff] %v499_v61  ;;  %v503_v63 = vld [vmem:[%s2495_s8 + $0x3f8] sm:$0xff] }
  0x31   : > { %502 = vst [vmem:[%s2500_s9 + $0x1f0] sm:$0xff] %v501_v62  ;;  %504 = vst [vmem:[%s2500_s9 + $0x1f8] sm:$0xff] %v503_v63 }
  0x32 PF: > { %510 = sbr.rel (!%p2477_p3) target bundleno = 86 (0x56), region = 58  ;;  %s512_s10 = sand.u32 (%p2477_p3), 1, %s2399_s19  }
  0x33   : > { %s2310_s11 = sshll.u32 (%p2477_p3), %s2407_s21, 8  ;;  %s2284_s12 = sshll.u32 (%p2477_p3), %s512_s10, 9 }
  0x34   : > { %s2634_s15 = scalar_lea.vmem (%p2477_p3), %s3222_s1, %s2310_s11  ;;  %s2639_s16 = scalar_lea.vmem (%p2477_p3), [#allocation3], %s2284_s12 }
  0x35   : > { %v674_v0 = vld [vmem:[%s2634_s15] sm:$0xff] (%p2477_p3)  ;;  %v676_v1 = vld [vmem:[%s2634_s15 + $0x8] sm:$0xff] (%p2477_p3)  ;;  %v678_v2 = vld [vmem:[%s2634_s15 + $0x10] sm:$0xff] (%p2477_p3) }
  0x36   : > { %675 = vst [vmem:[%s2639_s16] sm:$0xff] (%p2477_p3), %v674_v0  ;;  %677 = vst [vmem:[%s2639_s16 + $0x8] sm:$0xff] (%p2477_p3), %v676_v1  ;;  %v680_v3 = vld [vmem:[%s2634_s15 + $0x18] sm:$0xff] (%p2477_p3)  ;;  %v682_v4 = vld [vmem:[%s2634_s15 + $0x20] sm:$0xff] (%p2477_p3) }
  0x37   : > { %679 = vst [vmem:[%s2639_s16 + $0x10] sm:$0xff] (%p2477_p3), %v678_v2  ;;  %v684_v5 = vld [vmem:[%s2634_s15 + $0x28] sm:$0xff] (%p2477_p3)  ;;  %681 = vst [vmem:[%s2639_s16 + $0x18] sm:$0xff] (%p2477_p3), %v680_v3  ;;  %v686_v6 = vld [vmem:[%s2634_s15 + $0x30] sm:$0xff] (%p2477_p3) }
  0x38   : > { %683 = vst [vmem:[%s2639_s16 + $0x20] sm:$0xff] (%p2477_p3), %v682_v4  ;;  %685 = vst [vmem:[%s2639_s16 + $0x28] sm:$0xff] (%p2477_p3), %v684_v5  ;;  %v688_v7 = vld [vmem:[%s2634_s15 + $0x38] sm:$0xff] (%p2477_p3)  ;;  %v690_v8 = vld [vmem:[%s2634_s15 + $0x40] sm:$0xff] (%p2477_p3) }
  0x39   : > { %687 = vst [vmem:[%s2639_s16 + $0x30] sm:$0xff] %v686_v6  ;;  %689 = vst [vmem:[%s2639_s16 + $0x38] sm:$0xff] %v688_v7  ;;  %v692_v9 = vld [vmem:[%s2634_s15 + $0x48] sm:$0xff]  ;;  %v694_v10 = vld [vmem:[%s2634_s15 + $0x50] sm:$0xff] }
  0x3a   : > { %691 = vst [vmem:[%s2639_s16 + $0x40] sm:$0xff] %v690_v8  ;;  %v696_v11 = vld [vmem:[%s2634_s15 + $0x58] sm:$0xff]  ;;  %693 = vst [vmem:[%s2639_s16 + $0x48] sm:$0xff] %v692_v9  ;;  %v698_v12 = vld [vmem:[%s2634_s15 + $0x60] sm:$0xff] }
  0x3b   : > { %695 = vst [vmem:[%s2639_s16 + $0x50] sm:$0xff] %v694_v10  ;;  %697 = vst [vmem:[%s2639_s16 + $0x58] sm:$0xff] %v696_v11  ;;  %v700_v13 = vld [vmem:[%s2634_s15 + $0x68] sm:$0xff]  ;;  %v702_v14 = vld [vmem:[%s2634_s15 + $0x70] sm:$0xff] }
  0x3c   : > { %699 = vst [vmem:[%s2639_s16 + $0x60] sm:$0xff] %v698_v12  ;;  %701 = vst [vmem:[%s2639_s16 + $0x68] sm:$0xff] %v700_v13  ;;  %v704_v15 = vld [vmem:[%s2634_s15 + $0x78] sm:$0xff]  ;;  %v706_v16 = vld [vmem:[%s2634_s15 + $0x80] sm:$0xff] }
  0x3d   : > { %703 = vst [vmem:[%s2639_s16 + $0x70] sm:$0xff] %v702_v14  ;;  %v708_v17 = vld [vmem:[%s2634_s15 + $0x88] sm:$0xff]  ;;  %705 = vst [vmem:[%s2639_s16 + $0x78] sm:$0xff] %v704_v15  ;;  %v710_v18 = vld [vmem:[%s2634_s15 + $0x90] sm:$0xff] }
  0x3e   : > { %707 = vst [vmem:[%s2639_s16 + $0x80] sm:$0xff] %v706_v16  ;;  %709 = vst [vmem:[%s2639_s16 + $0x88] sm:$0xff] %v708_v17  ;;  %v712_v19 = vld [vmem:[%s2634_s15 + $0x98] sm:$0xff]  ;;  %v714_v20 = vld [vmem:[%s2634_s15 + $0xa0] sm:$0xff] }
  0x3f   : > { %711 = vst [vmem:[%s2639_s16 + $0x90] sm:$0xff] %v710_v18  ;;  %713 = vst [vmem:[%s2639_s16 + $0x98] sm:$0xff] %v712_v19  ;;  %v716_v21 = vld [vmem:[%s2634_s15 + $0xa8] sm:$0xff]  ;;  %v718_v22 = vld [vmem:[%s2634_s15 + $0xb0] sm:$0xff] }
  0x40   : > { %715 = vst [vmem:[%s2639_s16 + $0xa0] sm:$0xff] %v714_v20  ;;  %v720_v23 = vld [vmem:[%s2634_s15 + $0xb8] sm:$0xff]  ;;  %717 = vst [vmem:[%s2639_s16 + $0xa8] sm:$0xff] %v716_v21  ;;  %v722_v24 = vld [vmem:[%s2634_s15 + $0xc0] sm:$0xff] }
  0x41   : > { %719 = vst [vmem:[%s2639_s16 + $0xb0] sm:$0xff] %v718_v22  ;;  %721 = vst [vmem:[%s2639_s16 + $0xb8] sm:$0xff] %v720_v23  ;;  %v724_v25 = vld [vmem:[%s2634_s15 + $0xc8] sm:$0xff]  ;;  %v726_v26 = vld [vmem:[%s2634_s15 + $0xd0] sm:$0xff] }
  0x42   : > { %723 = vst [vmem:[%s2639_s16 + $0xc0] sm:$0xff] %v722_v24  ;;  %725 = vst [vmem:[%s2639_s16 + $0xc8] sm:$0xff] %v724_v25  ;;  %v728_v27 = vld [vmem:[%s2634_s15 + $0xd8] sm:$0xff]  ;;  %v730_v28 = vld [vmem:[%s2634_s15 + $0xe0] sm:$0xff] }
  0x43   : > { %727 = vst [vmem:[%s2639_s16 + $0xd0] sm:$0xff] %v726_v26  ;;  %v732_v29 = vld [vmem:[%s2634_s15 + $0xe8] sm:$0xff]  ;;  %729 = vst [vmem:[%s2639_s16 + $0xd8] sm:$0xff] %v728_v27  ;;  %v734_v30 = vld [vmem:[%s2634_s15 + $0xf0] sm:$0xff] }
  0x44   : > { %731 = vst [vmem:[%s2639_s16 + $0xe0] sm:$0xff] %v730_v28  ;;  %733 = vst [vmem:[%s2639_s16 + $0xe8] sm:$0xff] %v732_v29  ;;  %v736_v31 = vld [vmem:[%s2634_s15 + $0xf8] sm:$0xff]  ;;  %v738_v32 = vld [vmem:[%s2634_s15 + $0x300] sm:$0xff] }
  0x45   : > { %735 = vst [vmem:[%s2639_s16 + $0xf0] sm:$0xff] %v734_v30  ;;  %737 = vst [vmem:[%s2639_s16 + $0xf8] sm:$0xff] %v736_v31  ;;  %v740_v33 = vld [vmem:[%s2634_s15 + $0x308] sm:$0xff]  ;;  %v742_v34 = vld [vmem:[%s2634_s15 + $0x310] sm:$0xff] }
  0x46   : > { %739 = vst [vmem:[%s2639_s16 + $0x100] sm:$0xff] %v738_v32  ;;  %v744_v35 = vld [vmem:[%s2634_s15 + $0x318] sm:$0xff]  ;;  %741 = vst [vmem:[%s2639_s16 + $0x108] sm:$0xff] %v740_v33  ;;  %v746_v36 = vld [vmem:[%s2634_s15 + $0x320] sm:$0xff] }
  0x47   : > { %743 = vst [vmem:[%s2639_s16 + $0x110] sm:$0xff] %v742_v34  ;;  %745 = vst [vmem:[%s2639_s16 + $0x118] sm:$0xff] %v744_v35  ;;  %v748_v37 = vld [vmem:[%s2634_s15 + $0x328] sm:$0xff]  ;;  %v750_v38 = vld [vmem:[%s2634_s15 + $0x330] sm:$0xff] }
  0x48   : > { %747 = vst [vmem:[%s2639_s16 + $0x120] sm:$0xff] %v746_v36  ;;  %749 = vst [vmem:[%s2639_s16 + $0x128] sm:$0xff] %v748_v37  ;;  %v752_v39 = vld [vmem:[%s2634_s15 + $0x338] sm:$0xff]  ;;  %v754_v40 = vld [vmem:[%s2634_s15 + $0x340] sm:$0xff] }
  0x49   : > { %751 = vst [vmem:[%s2639_s16 + $0x130] sm:$0xff] %v750_v38  ;;  %v756_v41 = vld [vmem:[%s2634_s15 + $0x348] sm:$0xff]  ;;  %753 = vst [vmem:[%s2639_s16 + $0x138] sm:$0xff] %v752_v39  ;;  %v758_v42 = vld [vmem:[%s2634_s15 + $0x350] sm:$0xff] }
  0x4a   : > { %755 = vst [vmem:[%s2639_s16 + $0x140] sm:$0xff] %v754_v40  ;;  %757 = vst [vmem:[%s2639_s16 + $0x148] sm:$0xff] %v756_v41  ;;  %v760_v43 = vld [vmem:[%s2634_s15 + $0x358] sm:$0xff]  ;;  %v762_v44 = vld [vmem:[%s2634_s15 + $0x360] sm:$0xff] }
  0x4b   : > { %759 = vst [vmem:[%s2639_s16 + $0x150] sm:$0xff] %v758_v42  ;;  %761 = vst [vmem:[%s2639_s16 + $0x158] sm:$0xff] %v760_v43  ;;  %v764_v45 = vld [vmem:[%s2634_s15 + $0x368] sm:$0xff]  ;;  %v766_v46 = vld [vmem:[%s2634_s15 + $0x370] sm:$0xff] }
  0x4c   : > { %763 = vst [vmem:[%s2639_s16 + $0x160] sm:$0xff] %v762_v44  ;;  %v768_v47 = vld [vmem:[%s2634_s15 + $0x378] sm:$0xff]  ;;  %765 = vst [vmem:[%s2639_s16 + $0x168] sm:$0xff] %v764_v45  ;;  %v770_v48 = vld [vmem:[%s2634_s15 + $0x380] sm:$0xff] }
  0x4d   : > { %767 = vst [vmem:[%s2639_s16 + $0x170] sm:$0xff] %v766_v46  ;;  %769 = vst [vmem:[%s2639_s16 + $0x178] sm:$0xff] %v768_v47  ;;  %v772_v49 = vld [vmem:[%s2634_s15 + $0x388] sm:$0xff]  ;;  %v774_v50 = vld [vmem:[%s2634_s15 + $0x390] sm:$0xff] }
  0x4e   : > { %771 = vst [vmem:[%s2639_s16 + $0x180] sm:$0xff] %v770_v48  ;;  %773 = vst [vmem:[%s2639_s16 + $0x188] sm:$0xff] %v772_v49  ;;  %v776_v51 = vld [vmem:[%s2634_s15 + $0x398] sm:$0xff]  ;;  %v778_v52 = vld [vmem:[%s2634_s15 + $0x3a0] sm:$0xff] }
  0x4f   : > { %775 = vst [vmem:[%s2639_s16 + $0x190] sm:$0xff] %v774_v50  ;;  %v780_v53 = vld [vmem:[%s2634_s15 + $0x3a8] sm:$0xff]  ;;  %777 = vst [vmem:[%s2639_s16 + $0x198] sm:$0xff] %v776_v51  ;;  %v782_v54 = vld [vmem:[%s2634_s15 + $0x3b0] sm:$0xff] }
  0x50   : > { %779 = vst [vmem:[%s2639_s16 + $0x1a0] sm:$0xff] %v778_v52  ;;  %781 = vst [vmem:[%s2639_s16 + $0x1a8] sm:$0xff] %v780_v53  ;;  %v784_v55 = vld [vmem:[%s2634_s15 + $0x3b8] sm:$0xff]  ;;  %v786_v56 = vld [vmem:[%s2634_s15 + $0x3c0] sm:$0xff] }
  0x51   : > { %783 = vst [vmem:[%s2639_s16 + $0x1b0] sm:$0xff] %v782_v54  ;;  %785 = vst [vmem:[%s2639_s16 + $0x1b8] sm:$0xff] %v784_v55  ;;  %v788_v57 = vld [vmem:[%s2634_s15 + $0x3c8] sm:$0xff]  ;;  %v790_v58 = vld [vmem:[%s2634_s15 + $0x3d0] sm:$0xff] }
  0x52   : > { %787 = vst [vmem:[%s2639_s16 + $0x1c0] sm:$0xff] %v786_v56  ;;  %v792_v59 = vld [vmem:[%s2634_s15 + $0x3d8] sm:$0xff]  ;;  %789 = vst [vmem:[%s2639_s16 + $0x1c8] sm:$0xff] %v788_v57  ;;  %v794_v60 = vld [vmem:[%s2634_s15 + $0x3e0] sm:$0xff] }
  0x53   : > { %791 = vst [vmem:[%s2639_s16 + $0x1d0] sm:$0xff] %v790_v58  ;;  %793 = vst [vmem:[%s2639_s16 + $0x1d8] sm:$0xff] %v792_v59  ;;  %v796_v61 = vld [vmem:[%s2634_s15 + $0x3e8] sm:$0xff]  ;;  %v798_v62 = vld [vmem:[%s2634_s15 + $0x3f0] sm:$0xff] }
  0x54   : > { %795 = vst [vmem:[%s2639_s16 + $0x1e0] sm:$0xff] %v794_v60  ;;  %797 = vst [vmem:[%s2639_s16 + $0x1e8] sm:$0xff] %v796_v61  ;;  %v800_v63 = vld [vmem:[%s2634_s15 + $0x3f8] sm:$0xff] }
  0x55   : > { %799 = vst [vmem:[%s2639_s16 + $0x1f0] sm:$0xff] %v798_v62  ;;  %801 = vst [vmem:[%s2639_s16 + $0x1f8] sm:$0xff] %v800_v63 }
  0x56 PF: > { %807 = sbr.rel (!%p2477_p3) target bundleno = 122 (0x7a), region = 96  ;;  %s809_s17 = sand.u32 (%p2477_p3), 1, %s2399_s19  }
  0x57   : > { %s2311_s25 = sshll.u32 (%p2477_p3), %s2407_s21, 8  ;;  %s2287_s26 = sshll.u32 (%p2477_p3), %s809_s17, 9 }
  0x58   : > { %s2773_s30 = scalar_lea.vmem (%p2477_p3), %s3223_s2, %s2311_s25  ;;  %s2778_s24 = scalar_lea.vmem (%p2477_p3), [#allocation4], %s2287_s26 }
  0x59   : > { %v971_v0 = vld [vmem:[%s2773_s30] sm:$0xff] (%p2477_p3)  ;;  %v973_v1 = vld [vmem:[%s2773_s30 + $0x8] sm:$0xff] (%p2477_p3)  ;;  %v975_v2 = vld [vmem:[%s2773_s30 + $0x10] sm:$0xff] (%p2477_p3) }
  0x5a   : > { %972 = vst [vmem:[%s2778_s24] sm:$0xff] (%p2477_p3), %v971_v0  ;;  %974 = vst [vmem:[%s2778_s24 + $0x8] sm:$0xff] (%p2477_p3), %v973_v1  ;;  %v977_v3 = vld [vmem:[%s2773_s30 + $0x18] sm:$0xff] (%p2477_p3)  ;;  %v979_v4 = vld [vmem:[%s2773_s30 + $0x20] sm:$0xff] (%p2477_p3) }
  0x5b   : > { %976 = vst [vmem:[%s2778_s24 + $0x10] sm:$0xff] (%p2477_p3), %v975_v2  ;;  %v981_v5 = vld [vmem:[%s2773_s30 + $0x28] sm:$0xff] (%p2477_p3)  ;;  %978 = vst [vmem:[%s2778_s24 + $0x18] sm:$0xff] (%p2477_p3), %v977_v3  ;;  %v983_v6 = vld [vmem:[%s2773_s30 + $0x30] sm:$0xff] (%p2477_p3) }
  0x5c   : > { %980 = vst [vmem:[%s2778_s24 + $0x20] sm:$0xff] (%p2477_p3), %v979_v4  ;;  %982 = vst [vmem:[%s2778_s24 + $0x28] sm:$0xff] (%p2477_p3), %v981_v5  ;;  %v985_v7 = vld [vmem:[%s2773_s30 + $0x38] sm:$0xff] (%p2477_p3)  ;;  %v987_v8 = vld [vmem:[%s2773_s30 + $0x40] sm:$0xff] (%p2477_p3) }
  0x5d   : > { %984 = vst [vmem:[%s2778_s24 + $0x30] sm:$0xff] %v983_v6  ;;  %986 = vst [vmem:[%s2778_s24 + $0x38] sm:$0xff] %v985_v7  ;;  %v989_v9 = vld [vmem:[%s2773_s30 + $0x48] sm:$0xff]  ;;  %v991_v10 = vld [vmem:[%s2773_s30 + $0x50] sm:$0xff] }
  0x5e   : > { %988 = vst [vmem:[%s2778_s24 + $0x40] sm:$0xff] %v987_v8  ;;  %v993_v11 = vld [vmem:[%s2773_s30 + $0x58] sm:$0xff]  ;;  %990 = vst [vmem:[%s2778_s24 + $0x48] sm:$0xff] %v989_v9  ;;  %v995_v12 = vld [vmem:[%s2773_s30 + $0x60] sm:$0xff] }
  0x5f   : > { %992 = vst [vmem:[%s2778_s24 + $0x50] sm:$0xff] %v991_v10  ;;  %994 = vst [vmem:[%s2778_s24 + $0x58] sm:$0xff] %v993_v11  ;;  %v997_v13 = vld [vmem:[%s2773_s30 + $0x68] sm:$0xff]  ;;  %v999_v14 = vld [vmem:[%s2773_s30 + $0x70] sm:$0xff] }
  0x60   : > { %996 = vst [vmem:[%s2778_s24 + $0x60] sm:$0xff] %v995_v12  ;;  %998 = vst [vmem:[%s2778_s24 + $0x68] sm:$0xff] %v997_v13  ;;  %v1001_v15 = vld [vmem:[%s2773_s30 + $0x78] sm:$0xff]  ;;  %v1003_v16 = vld [vmem:[%s2773_s30 + $0x80] sm:$0xff] }
  0x61   : > { %1000 = vst [vmem:[%s2778_s24 + $0x70] sm:$0xff] %v999_v14  ;;  %v1005_v17 = vld [vmem:[%s2773_s30 + $0x88] sm:$0xff]  ;;  %1002 = vst [vmem:[%s2778_s24 + $0x78] sm:$0xff] %v1001_v15  ;;  %v1007_v18 = vld [vmem:[%s2773_s30 + $0x90] sm:$0xff] }
  0x62   : > { %1004 = vst [vmem:[%s2778_s24 + $0x80] sm:$0xff] %v1003_v16  ;;  %1006 = vst [vmem:[%s2778_s24 + $0x88] sm:$0xff] %v1005_v17  ;;  %v1009_v19 = vld [vmem:[%s2773_s30 + $0x98] sm:$0xff]  ;;  %v1011_v20 = vld [vmem:[%s2773_s30 + $0xa0] sm:$0xff] }
  0x63   : > { %1008 = vst [vmem:[%s2778_s24 + $0x90] sm:$0xff] %v1007_v18  ;;  %1010 = vst [vmem:[%s2778_s24 + $0x98] sm:$0xff] %v1009_v19  ;;  %v1013_v21 = vld [vmem:[%s2773_s30 + $0xa8] sm:$0xff]  ;;  %v1015_v22 = vld [vmem:[%s2773_s30 + $0xb0] sm:$0xff] }
  0x64   : > { %1012 = vst [vmem:[%s2778_s24 + $0xa0] sm:$0xff] %v1011_v20  ;;  %v1017_v23 = vld [vmem:[%s2773_s30 + $0xb8] sm:$0xff]  ;;  %1014 = vst [vmem:[%s2778_s24 + $0xa8] sm:$0xff] %v1013_v21  ;;  %v1019_v24 = vld [vmem:[%s2773_s30 + $0xc0] sm:$0xff] }
  0x65   : > { %1016 = vst [vmem:[%s2778_s24 + $0xb0] sm:$0xff] %v1015_v22  ;;  %1018 = vst [vmem:[%s2778_s24 + $0xb8] sm:$0xff] %v1017_v23  ;;  %v1021_v25 = vld [vmem:[%s2773_s30 + $0xc8] sm:$0xff]  ;;  %v1023_v26 = vld [vmem:[%s2773_s30 + $0xd0] sm:$0xff] }
  0x66   : > { %1020 = vst [vmem:[%s2778_s24 + $0xc0] sm:$0xff] %v1019_v24  ;;  %1022 = vst [vmem:[%s2778_s24 + $0xc8] sm:$0xff] %v1021_v25  ;;  %v1025_v27 = vld [vmem:[%s2773_s30 + $0xd8] sm:$0xff]  ;;  %v1027_v28 = vld [vmem:[%s2773_s30 + $0xe0] sm:$0xff] }
  0x67   : > { %1024 = vst [vmem:[%s2778_s24 + $0xd0] sm:$0xff] %v1023_v26  ;;  %v1029_v29 = vld [vmem:[%s2773_s30 + $0xe8] sm:$0xff]  ;;  %1026 = vst [vmem:[%s2778_s24 + $0xd8] sm:$0xff] %v1025_v27  ;;  %v1031_v30 = vld [vmem:[%s2773_s30 + $0xf0] sm:$0xff] }
  0x68   : > { %1028 = vst [vmem:[%s2778_s24 + $0xe0] sm:$0xff] %v1027_v28  ;;  %1030 = vst [vmem:[%s2778_s24 + $0xe8] sm:$0xff] %v1029_v29  ;;  %v1033_v31 = vld [vmem:[%s2773_s30 + $0xf8] sm:$0xff]  ;;  %v1035_v32 = vld [vmem:[%s2773_s30 + $0x300] sm:$0xff] }
  0x69   : > { %1032 = vst [vmem:[%s2778_s24 + $0xf0] sm:$0xff] %v1031_v30  ;;  %1034 = vst [vmem:[%s2778_s24 + $0xf8] sm:$0xff] %v1033_v31  ;;  %v1037_v33 = vld [vmem:[%s2773_s30 + $0x308] sm:$0xff]  ;;  %v1039_v34 = vld [vmem:[%s2773_s30 + $0x310] sm:$0xff] }
  0x6a   : > { %1036 = vst [vmem:[%s2778_s24 + $0x100] sm:$0xff] %v1035_v32  ;;  %v1041_v35 = vld [vmem:[%s2773_s30 + $0x318] sm:$0xff]  ;;  %1038 = vst [vmem:[%s2778_s24 + $0x108] sm:$0xff] %v1037_v33  ;;  %v1043_v36 = vld [vmem:[%s2773_s30 + $0x320] sm:$0xff] }
  0x6b   : > { %1040 = vst [vmem:[%s2778_s24 + $0x110] sm:$0xff] %v1039_v34  ;;  %1042 = vst [vmem:[%s2778_s24 + $0x118] sm:$0xff] %v1041_v35  ;;  %v1045_v37 = vld [vmem:[%s2773_s30 + $0x328] sm:$0xff]  ;;  %v1047_v38 = vld [vmem:[%s2773_s30 + $0x330] sm:$0xff] }
  0x6c   : > { %1044 = vst [vmem:[%s2778_s24 + $0x120] sm:$0xff] %v1043_v36  ;;  %1046 = vst [vmem:[%s2778_s24 + $0x128] sm:$0xff] %v1045_v37  ;;  %v1049_v39 = vld [vmem:[%s2773_s30 + $0x338] sm:$0xff]  ;;  %v1051_v40 = vld [vmem:[%s2773_s30 + $0x340] sm:$0xff] }
  0x6d   : > { %1048 = vst [vmem:[%s2778_s24 + $0x130] sm:$0xff] %v1047_v38  ;;  %v1053_v41 = vld [vmem:[%s2773_s30 + $0x348] sm:$0xff]  ;;  %1050 = vst [vmem:[%s2778_s24 + $0x138] sm:$0xff] %v1049_v39  ;;  %v1055_v42 = vld [vmem:[%s2773_s30 + $0x350] sm:$0xff] }
  0x6e   : > { %1052 = vst [vmem:[%s2778_s24 + $0x140] sm:$0xff] %v1051_v40  ;;  %1054 = vst [vmem:[%s2778_s24 + $0x148] sm:$0xff] %v1053_v41  ;;  %v1057_v43 = vld [vmem:[%s2773_s30 + $0x358] sm:$0xff]  ;;  %v1059_v44 = vld [vmem:[%s2773_s30 + $0x360] sm:$0xff] }
  0x6f   : > { %1056 = vst [vmem:[%s2778_s24 + $0x150] sm:$0xff] %v1055_v42  ;;  %1058 = vst [vmem:[%s2778_s24 + $0x158] sm:$0xff] %v1057_v43  ;;  %v1061_v45 = vld [vmem:[%s2773_s30 + $0x368] sm:$0xff]  ;;  %v1063_v46 = vld [vmem:[%s2773_s30 + $0x370] sm:$0xff] }
  0x70   : > { %1060 = vst [vmem:[%s2778_s24 + $0x160] sm:$0xff] %v1059_v44  ;;  %v1065_v47 = vld [vmem:[%s2773_s30 + $0x378] sm:$0xff]  ;;  %1062 = vst [vmem:[%s2778_s24 + $0x168] sm:$0xff] %v1061_v45  ;;  %v1067_v48 = vld [vmem:[%s2773_s30 + $0x380] sm:$0xff] }
  0x71   : > { %1064 = vst [vmem:[%s2778_s24 + $0x170] sm:$0xff] %v1063_v46  ;;  %1066 = vst [vmem:[%s2778_s24 + $0x178] sm:$0xff] %v1065_v47  ;;  %v1069_v49 = vld [vmem:[%s2773_s30 + $0x388] sm:$0xff]  ;;  %v1071_v50 = vld [vmem:[%s2773_s30 + $0x390] sm:$0xff] }
  0x72   : > { %1068 = vst [vmem:[%s2778_s24 + $0x180] sm:$0xff] %v1067_v48  ;;  %1070 = vst [vmem:[%s2778_s24 + $0x188] sm:$0xff] %v1069_v49  ;;  %v1073_v51 = vld [vmem:[%s2773_s30 + $0x398] sm:$0xff]  ;;  %v1075_v52 = vld [vmem:[%s2773_s30 + $0x3a0] sm:$0xff] }
  0x73   : > { %1072 = vst [vmem:[%s2778_s24 + $0x190] sm:$0xff] %v1071_v50  ;;  %v1077_v53 = vld [vmem:[%s2773_s30 + $0x3a8] sm:$0xff]  ;;  %1074 = vst [vmem:[%s2778_s24 + $0x198] sm:$0xff] %v1073_v51  ;;  %v1079_v54 = vld [vmem:[%s2773_s30 + $0x3b0] sm:$0xff] }
  0x74   : > { %1076 = vst [vmem:[%s2778_s24 + $0x1a0] sm:$0xff] %v1075_v52  ;;  %1078 = vst [vmem:[%s2778_s24 + $0x1a8] sm:$0xff] %v1077_v53  ;;  %v1081_v55 = vld [vmem:[%s2773_s30 + $0x3b8] sm:$0xff]  ;;  %v1083_v56 = vld [vmem:[%s2773_s30 + $0x3c0] sm:$0xff] }
  0x75   : > { %1080 = vst [vmem:[%s2778_s24 + $0x1b0] sm:$0xff] %v1079_v54  ;;  %1082 = vst [vmem:[%s2778_s24 + $0x1b8] sm:$0xff] %v1081_v55  ;;  %v1085_v57 = vld [vmem:[%s2773_s30 + $0x3c8] sm:$0xff]  ;;  %v1087_v58 = vld [vmem:[%s2773_s30 + $0x3d0] sm:$0xff] }
  0x76   : > { %1084 = vst [vmem:[%s2778_s24 + $0x1c0] sm:$0xff] %v1083_v56  ;;  %v1089_v59 = vld [vmem:[%s2773_s30 + $0x3d8] sm:$0xff]  ;;  %1086 = vst [vmem:[%s2778_s24 + $0x1c8] sm:$0xff] %v1085_v57  ;;  %v1091_v60 = vld [vmem:[%s2773_s30 + $0x3e0] sm:$0xff] }
  0x77   : > { %1088 = vst [vmem:[%s2778_s24 + $0x1d0] sm:$0xff] %v1087_v58  ;;  %1090 = vst [vmem:[%s2778_s24 + $0x1d8] sm:$0xff] %v1089_v59  ;;  %v1093_v61 = vld [vmem:[%s2773_s30 + $0x3e8] sm:$0xff]  ;;  %v1095_v62 = vld [vmem:[%s2773_s30 + $0x3f0] sm:$0xff] }
  0x78   : > { %1092 = vst [vmem:[%s2778_s24 + $0x1e0] sm:$0xff] %v1091_v60  ;;  %1094 = vst [vmem:[%s2778_s24 + $0x1e8] sm:$0xff] %v1093_v61  ;;  %v1097_v63 = vld [vmem:[%s2773_s30 + $0x3f8] sm:$0xff] }
  0x79   : > { %1096 = vst [vmem:[%s2778_s24 + $0x1f0] sm:$0xff] %v1095_v62  ;;  %1098 = vst [vmem:[%s2778_s24 + $0x1f8] sm:$0xff] %v1097_v63 }
  0x7a PF: > { %p2290_p6 = scmp.ge.s32.totalorder %s2411_s22, 1  ;;  %p1116_p7 = scmp.lt.s32.totalorder %s2411_s22, 4 }
  0x7c   : > { %p1117_p8 = pnand %p2290_p6, %p1116_p7 }
  0x7d   : > { %s1123_s6 = sand.u32 (!%p1117_p8), 1, %s2395_s18   ;;  %s2294_s9 = sshll.u32 (!%p1117_p8), %s2403_s20, 1  ;;  %vm1590_vm5 = vcmask (!%p1117_p8), 1041409   ;;  %vm1592_vm6 = vcmask (!%p1117_p8), 1043459   ;;  %vm1594_vm7 = vcmask (!%p1117_p8), 1045509   ;;  %vm1596_vm8 = vcmask (!%p1117_p8), 1047559  }
  0x7e   : > { %1120 = sbr.rel (%p1117_p8) target bundleno = 811 (0x32b), region = 138  ;;  %s2908_s7 = sshll.u32 (!%p1117_p8), %s1123_s6, 9  ;;  %vm2012_vm11 = vcmask (!%p1117_p8), 1043456   ;;  %vm2070_vm14 = vcmask (!%p1117_p8), 1041408   ;;  %vm2084_vm15 = vcmask (!%p1117_p8), 0  }
  0x7f   : > { %s2911_s8 = scalar_lea.vmem (!%p1117_p8), [#allocation3], %s2908_s7  ;;  %s2978_s18 = scalar_lea.vmem (!%p1117_p8), [#allocation2], %s2908_s7 }
  0x80   : > { %v1247_v0 = vld [vmem:[%s2911_s8 + $0x80] sm:$0xff] (!%p1117_p8)  ;;  %v1248_v2 = vld [vmem:[%s2911_s8 + $0x88] sm:$0xff] (!%p1117_p8)  ;;  %v1249_v4 = vld [vmem:[%s2911_s8 + $0x90] sm:$0xff] (!%p1117_p8)  ;;  %p1201_p9 = scmp.lt.s32.totalorder (!%p1117_p8), %s2294_s9, 5  ;;  %s3074_s14 = scalar_lea.vmem (!%p1117_p8), [#allocation4], %s2908_s7 }
  0x81   : > { %v1231_v1 = vld [vmem:[%s2911_s8] sm:$0xff] (!%p1117_p8)  ;;  %1327 = vxpose.xlu1.b32.start [1/16] (narrow) (!%p1117_p8), %v1247_v0, 8  ;;  %v1232_v3 = vld [vmem:[%s2911_s8 + $0x8] sm:$0xff] (!%p1117_p8)  ;;  %v1233_v5 = vld [vmem:[%s2911_s8 + $0x10] sm:$0xff] (!%p1117_p8)  ;;  %p1220_p10 = scmp.lt.s32.totalorder (!%p1117_p8), %s2403_s20, 2 }
  0x82   : > { %1295 = vxpose.xlu0.b32.start [1/16] (narrow) (!%p1117_p8), %v1231_v1, 8  ;;  %v1250_v6 = vld [vmem:[%s2911_s8 + $0x98] sm:$0xff] (!%p1117_p8)  ;;  %v1251_v8 = vld [vmem:[%s2911_s8 + $0xa0] sm:$0xff] (!%p1117_p8)  ;;  %v1252_v10 = vld [vmem:[%s2911_s8 + $0xa8] sm:$0xff] (!%p1117_p8) }
  0x83   : > { %v1234_v7 = vld [vmem:[%s2911_s8 + $0x18] sm:$0xff] (!%p1117_p8)  ;;  %v1235_v9 = vld [vmem:[%s2911_s8 + $0x20] sm:$0xff] (!%p1117_p8)  ;;  %v1236_v11 = vld [vmem:[%s2911_s8 + $0x28] sm:$0xff] (!%p1117_p8) }
  0x84   : > { %v1253_v12 = vld [vmem:[%s2911_s8 + $0xb0] sm:$0xff] (!%p1117_p8)  ;;  %v1254_v14 = vld [vmem:[%s2911_s8 + $0xb8] sm:$0xff] (!%p1117_p8)  ;;  %v1255_v16 = vld [vmem:[%s2911_s8 + $0xc0] sm:$0xff] (!%p1117_p8) }
  0x85   : > { %1328 = vxpose.xlu1.b32.cont [2/16] (narrow) %v1248_v2, 8  ;;  %v1237_v13 = vld [vmem:[%s2911_s8 + $0x30] sm:$0xff]  ;;  %v1238_v15 = vld [vmem:[%s2911_s8 + $0x38] sm:$0xff]  ;;  %v1239_v17 = vld [vmem:[%s2911_s8 + $0x40] sm:$0xff]  ;;  %s3235_s9 = smov (!%p1201_p9, %s2294_s9), 5  ;;  %s3237_s20 = smov (!%p1220_p10, %s2403_s20), 2 }
  0x86   : > { %1296 = vxpose.xlu0.b32.cont [2/16] (narrow) %v1232_v3, 8  ;;  %v1256_v18 = vld [vmem:[%s2911_s8 + $0xc8] sm:$0xff]  ;;  %v1257_v20 = vld [vmem:[%s2911_s8 + $0xd0] sm:$0xff]  ;;  %v1258_v22 = vld [vmem:[%s2911_s8 + $0xd8] sm:$0xff]  ;;  %s2295_s10 = sshll.u32 %s3235_s9, 1  ;;  %s1224_s28 = scalar_lea.vmem %s3226_s5, %s3237_s20 }
  0x87   : > { %v1240_v19 = vld [vmem:[%s2911_s8 + $0x48] sm:$0xff]  ;;  %v1241_v21 = vld [vmem:[%s2911_s8 + $0x50] sm:$0xff]  ;;  %v1242_v23 = vld [vmem:[%s2911_s8 + $0x58] sm:$0xff]  ;;  %s1206_s13 = scalar_lea.vmem %s3224_s3, %s2295_s10  ;;  %s1216_s17 = scalar_lea.vmem %s3225_s4, %s2295_s10 }
  0x88   : > { %v1259_v24 = vld [vmem:[%s2911_s8 + $0xe0] sm:$0xff]  ;;  %v1260_v26 = vld [vmem:[%s2911_s8 + $0xe8] sm:$0xff]  ;;  %v1261_v28 = vld [vmem:[%s2911_s8 + $0xf0] sm:$0xff] }
  0x89   : > { %1329 = vxpose.xlu1.b32.cont [3/16] (narrow) %v1249_v4, 8  ;;  %v1243_v25 = vld [vmem:[%s2911_s8 + $0x60] sm:$0xff]  ;;  %v1244_v27 = vld [vmem:[%s2911_s8 + $0x68] sm:$0xff]  ;;  %v1245_v29 = vld [vmem:[%s2911_s8 + $0x70] sm:$0xff] }
  0x8a   : > { %1297 = vxpose.xlu0.b32.cont [3/16] (narrow) %v1233_v5, 8  ;;  %v1262_v30 = vld [vmem:[%s2911_s8 + $0xf8] sm:$0xff]  ;;  %v1279_v32 = vld [vmem:[%s2911_s8 + $0x180] sm:$0xff]  ;;  %v1280_v34 = vld [vmem:[%s2911_s8 + $0x188] sm:$0xff] }
  0x8b   : > { %v1246_v31 = vld [vmem:[%s2911_s8 + $0x78] sm:$0xff]  ;;  %v1263_v33 = vld [vmem:[%s2911_s8 + $0x100] sm:$0xff]  ;;  %v1264_v35 = vld [vmem:[%s2911_s8 + $0x108] sm:$0xff] }
  0x8c   : > { %v1281_v36 = vld [vmem:[%s2911_s8 + $0x190] sm:$0xff]  ;;  %v1282_v38 = vld [vmem:[%s2911_s8 + $0x198] sm:$0xff]  ;;  %v1283_v40 = vld [vmem:[%s2911_s8 + $0x1a0] sm:$0xff] }
  0x8d   : > { %1330 = vxpose.xlu1.b32.cont [4/16] (narrow) %v1250_v6, 8  ;;  %v1265_v37 = vld [vmem:[%s2911_s8 + $0x110] sm:$0xff]  ;;  %v1266_v39 = vld [vmem:[%s2911_s8 + $0x118] sm:$0xff]  ;;  %v1267_v41 = vld [vmem:[%s2911_s8 + $0x120] sm:$0xff] }
  0x8e   : > { %1298 = vxpose.xlu0.b32.cont [4/16] (narrow) %v1234_v7, 8  ;;  %v1284_v42 = vld [vmem:[%s2911_s8 + $0x1a8] sm:$0xff]  ;;  %v1285_v44 = vld [vmem:[%s2911_s8 + $0x1b0] sm:$0xff]  ;;  %v1286_v46 = vld [vmem:[%s2911_s8 + $0x1b8] sm:$0xff] }
  0x8f   : > { %v1268_v43 = vld [vmem:[%s2911_s8 + $0x128] sm:$0xff]  ;;  %v1269_v45 = vld [vmem:[%s2911_s8 + $0x130] sm:$0xff]  ;;  %v1270_v47 = vld [vmem:[%s2911_s8 + $0x138] sm:$0xff] }
  0x90   : > { %v1287_v48 = vld [vmem:[%s2911_s8 + $0x1c0] sm:$0xff]  ;;  %v1288_v50 = vld [vmem:[%s2911_s8 + $0x1c8] sm:$0xff]  ;;  %v1289_v52 = vld [vmem:[%s2911_s8 + $0x1d0] sm:$0xff] }
  0x91   : > { %1331 = vxpose.xlu1.b32.cont [5/16] (narrow) %v1251_v8, 8  ;;  %v1271_v49 = vld [vmem:[%s2911_s8 + $0x140] sm:$0xff]  ;;  %v1272_v51 = vld [vmem:[%s2911_s8 + $0x148] sm:$0xff]  ;;  %v1273_v53 = vld [vmem:[%s2911_s8 + $0x150] sm:$0xff] }
  0x92   : > { %1299 = vxpose.xlu0.b32.cont [5/16] (narrow) %v1235_v9, 8  ;;  %v1290_v54 = vld [vmem:[%s2911_s8 + $0x1d8] sm:$0xff]  ;;  %v1291_v56 = vld [vmem:[%s2911_s8 + $0x1e0] sm:$0xff]  ;;  %v1292_v58 = vld [vmem:[%s2911_s8 + $0x1e8] sm:$0xff] }
  0x93   : > { %v1274_v55 = vld [vmem:[%s2911_s8 + $0x158] sm:$0xff]  ;;  %v1275_v57 = vld [vmem:[%s2911_s8 + $0x160] sm:$0xff]  ;;  %v1276_v59 = vld [vmem:[%s2911_s8 + $0x168] sm:$0xff] }
  0x94   : > { %v1293_v60 = vld [vmem:[%s2911_s8 + $0x1f0] sm:$0xff]  ;;  %v1294_v62 = vld [vmem:[%s2911_s8 + $0x1f8] sm:$0xff]  ;;  %v1616_v0 = vld [vmem:[%s2978_s18 + $0x80] sm:$0xff] }
  0x95   : > { %1332 = vxpose.xlu1.b32.cont [6/16] (narrow) %v1252_v10, 8  ;;  %v1277_v61 = vld [vmem:[%s2911_s8 + $0x170] sm:$0xff]  ;;  %v1278_v63 = vld [vmem:[%s2911_s8 + $0x178] sm:$0xff]  ;;  %v1600_v1 = vld [vmem:[%s2978_s18] sm:$0xff] }
  0x96   : > { %1300 = vxpose.xlu0.b32.cont [6/16] (narrow) %v1236_v11, 8  ;;  %v1617_v2 = vld [vmem:[%s2978_s18 + $0x88] sm:$0xff]  ;;  %v1618_v4 = vld [vmem:[%s2978_s18 + $0x90] sm:$0xff]  ;;  %v1619_v6 = vld [vmem:[%s2978_s18 + $0x98] sm:$0xff] }
  0x97   : > { %v1601_v3 = vld [vmem:[%s2978_s18 + $0x8] sm:$0xff]  ;;  %v1602_v5 = vld [vmem:[%s2978_s18 + $0x10] sm:$0xff]  ;;  %v1603_v7 = vld [vmem:[%s2978_s18 + $0x18] sm:$0xff] }
  0x98   : > { %v1620_v8 = vld [vmem:[%s2978_s18 + $0xa0] sm:$0xff]  ;;  %v1621_v10 = vld [vmem:[%s2978_s18 + $0xa8] sm:$0xff] }
  0x99   : > { %1333 = vxpose.xlu1.b32.cont [7/16] (narrow) %v1253_v12, 8  ;;  %v1604_v9 = vld [vmem:[%s2978_s18 + $0x20] sm:$0xff]  ;;  %v1605_v11 = vld [vmem:[%s2978_s18 + $0x28] sm:$0xff]  ;;  %v1622_v12 = vld [vmem:[%s2978_s18 + $0xb0] sm:$0xff] }
  0x9a   : > { %1301 = vxpose.xlu0.b32.cont [7/16] (narrow) %v1237_v13, 8  ;;  %v1606_v13 = vld [vmem:[%s2978_s18 + $0x30] sm:$0xff] }
  0x9d   : > { %1334 = vxpose.xlu1.b32.cont [8/16] (narrow) %v1254_v14, 8  ;;  %v1623_v14 = vld [vmem:[%s2978_s18 + $0xb8] sm:$0xff] }
  0x9e   : > { %1302 = vxpose.xlu0.b32.cont [8/16] (narrow) %v1238_v15, 8  ;;  %v1607_v15 = vld [vmem:[%s2978_s18 + $0x38] sm:$0xff] }
  0xa1   : > { %1335 = vxpose.xlu1.b32.cont [9/16] (narrow) %v1255_v16, 8  ;;  %v1624_v16 = vld [vmem:[%s2978_s18 + $0xc0] sm:$0xff] }
  0xa2   : > { %1303 = vxpose.xlu0.b32.cont [9/16] (narrow) %v1239_v17, 8  ;;  %v1608_v17 = vld [vmem:[%s2978_s18 + $0x40] sm:$0xff] }
  0xa5   : > { %1336 = vxpose.xlu1.b32.cont [10/16] (narrow) %v1256_v18, 8  ;;  %v1625_v18 = vld [vmem:[%s2978_s18 + $0xc8] sm:$0xff] }
  0xa6   : > { %1304 = vxpose.xlu0.b32.cont [10/16] (narrow) %v1240_v19, 8  ;;  %v1609_v19 = vld [vmem:[%s2978_s18 + $0x48] sm:$0xff] }
  0xa9   : > { %1337 = vxpose.xlu1.b32.cont [11/16] (narrow) %v1257_v20, 8  ;;  %v1626_v20 = vld [vmem:[%s2978_s18 + $0xd0] sm:$0xff] }
  0xaa   : > { %1305 = vxpose.xlu0.b32.cont [11/16] (narrow) %v1241_v21, 8  ;;  %v1610_v21 = vld [vmem:[%s2978_s18 + $0x50] sm:$0xff] }
  0xad   : > { %1338 = vxpose.xlu1.b32.cont [12/16] (narrow) %v1258_v22, 8  ;;  %v1627_v22 = vld [vmem:[%s2978_s18 + $0xd8] sm:$0xff] }
  0xae   : > { %1306 = vxpose.xlu0.b32.cont [12/16] (narrow) %v1242_v23, 8  ;;  %v1611_v23 = vld [vmem:[%s2978_s18 + $0x58] sm:$0xff] }
  0xb1   : > { %1339 = vxpose.xlu1.b32.cont [13/16] (narrow) %v1259_v24, 8  ;;  %v1628_v24 = vld [vmem:[%s2978_s18 + $0xe0] sm:$0xff] }
  0xb2   : > { %1307 = vxpose.xlu0.b32.cont [13/16] (narrow) %v1243_v25, 8  ;;  %v1612_v25 = vld [vmem:[%s2978_s18 + $0x60] sm:$0xff] }
  0xb5   : > { %1340 = vxpose.xlu1.b32.cont [14/16] (narrow) %v1260_v26, 8  ;;  %v1629_v26 = vld [vmem:[%s2978_s18 + $0xe8] sm:$0xff] }
  0xb6   : > { %1308 = vxpose.xlu0.b32.cont [14/16] (narrow) %v1244_v27, 8  ;;  %v1613_v27 = vld [vmem:[%s2978_s18 + $0x68] sm:$0xff] }
  0xb9   : > { %1341 = vxpose.xlu1.b32.cont [15/16] (narrow) %v1261_v28, 8  ;;  %v1630_v28 = vld [vmem:[%s2978_s18 + $0xf0] sm:$0xff] }
  0xba   : > { %1309 = vxpose.xlu0.b32.cont [15/16] (narrow) %v1245_v29, 8  ;;  %v1614_v29 = vld [vmem:[%s2978_s18 + $0x70] sm:$0xff] }
  0xbd   : > { %1342 = vxpose.xlu1.b32.end [16/16] (narrow) %v1262_v30, 8  ;;  %v1631_v30 = vld [vmem:[%s2978_s18 + $0xf8] sm:$0xff] }
  0xbe   : > { %1310 = vxpose.xlu0.b32.end [16/16] (narrow) %v1246_v31, 8  ;;  %v1615_v31 = vld [vmem:[%s2978_s18 + $0x78] sm:$0xff] }
  0xc1   : > { %1391 = vxpose.xlu1.b32.start [1/16] (narrow) %v1279_v32, 8  ;;  %v1648_v32 = vld [vmem:[%s2978_s18 + $0x180] sm:$0xff] }
  0xc2   : > { %1359 = vxpose.xlu0.b32.start [1/16] (narrow) %v1263_v33, 8  ;;  %v1632_v33 = vld [vmem:[%s2978_s18 + $0x100] sm:$0xff] }
  0xc5   : > { %1392 = vxpose.xlu1.b32.cont [2/16] (narrow) %v1280_v34, 8  ;;  %v1649_v34 = vld [vmem:[%s2978_s18 + $0x188] sm:$0xff] }
  0xc6   : > { %1360 = vxpose.xlu0.b32.cont [2/16] (narrow) %v1264_v35, 8  ;;  %v1633_v35 = vld [vmem:[%s2978_s18 + $0x108] sm:$0xff] }
  0xc9   : > { %1393 = vxpose.xlu1.b32.cont [3/16] (narrow) %v1281_v36, 8  ;;  %v1650_v36 = vld [vmem:[%s2978_s18 + $0x190] sm:$0xff] }
  0xca   : > { %1361 = vxpose.xlu0.b32.cont [3/16] (narrow) %v1265_v37, 8  ;;  %v1634_v37 = vld [vmem:[%s2978_s18 + $0x110] sm:$0xff] }
  0xcd   : > { %1394 = vxpose.xlu1.b32.cont [4/16] (narrow) %v1282_v38, 8  ;;  %v1651_v38 = vld [vmem:[%s2978_s18 + $0x198] sm:$0xff] }
  0xce   : > { %1362 = vxpose.xlu0.b32.cont [4/16] (narrow) %v1266_v39, 8  ;;  %v1635_v39 = vld [vmem:[%s2978_s18 + $0x118] sm:$0xff] }
  0xd1   : > { %1395 = vxpose.xlu1.b32.cont [5/16] (narrow) %v1283_v40, 8  ;;  %v1652_v40 = vld [vmem:[%s2978_s18 + $0x1a0] sm:$0xff] }
  0xd2   : > { %1363 = vxpose.xlu0.b32.cont [5/16] (narrow) %v1267_v41, 8  ;;  %v1636_v41 = vld [vmem:[%s2978_s18 + $0x120] sm:$0xff] }
  0xd5   : > { %1396 = vxpose.xlu1.b32.cont [6/16] (narrow) %v1284_v42, 8  ;;  %v1653_v42 = vld [vmem:[%s2978_s18 + $0x1a8] sm:$0xff] }
  0xd6   : > { %1364 = vxpose.xlu0.b32.cont [6/16] (narrow) %v1268_v43, 8  ;;  %v1637_v43 = vld [vmem:[%s2978_s18 + $0x128] sm:$0xff] }
  0xd9   : > { %1397 = vxpose.xlu1.b32.cont [7/16] (narrow) %v1285_v44, 8  ;;  %v1654_v44 = vld [vmem:[%s2978_s18 + $0x1b0] sm:$0xff] }
  0xda   : > { %1365 = vxpose.xlu0.b32.cont [7/16] (narrow) %v1269_v45, 8  ;;  %v1638_v45 = vld [vmem:[%s2978_s18 + $0x130] sm:$0xff] }
  0xdd   : > { %1398 = vxpose.xlu1.b32.cont [8/16] (narrow) %v1286_v46, 8  ;;  %v1655_v46 = vld [vmem:[%s2978_s18 + $0x1b8] sm:$0xff] }
  0xde   : > { %1366 = vxpose.xlu0.b32.cont [8/16] (narrow) %v1270_v47, 8  ;;  %v1639_v47 = vld [vmem:[%s2978_s18 + $0x138] sm:$0xff] }
  0xe1   : > { %1399 = vxpose.xlu1.b32.cont [9/16] (narrow) %v1287_v48, 8  ;;  %v1656_v48 = vld [vmem:[%s2978_s18 + $0x1c0] sm:$0xff] }
  0xe2   : > { %1367 = vxpose.xlu0.b32.cont [9/16] (narrow) %v1271_v49, 8  ;;  %v1640_v49 = vld [vmem:[%s2978_s18 + $0x140] sm:$0xff] }
  0xe5   : > { %1400 = vxpose.xlu1.b32.cont [10/16] (narrow) %v1288_v50, 8  ;;  %v1657_v50 = vld [vmem:[%s2978_s18 + $0x1c8] sm:$0xff] }
  0xe6   : > { %1368 = vxpose.xlu0.b32.cont [10/16] (narrow) %v1272_v51, 8  ;;  %v1641_v51 = vld [vmem:[%s2978_s18 + $0x148] sm:$0xff] }
  0xe9   : > { %1401 = vxpose.xlu1.b32.cont [11/16] (narrow) %v1289_v52, 8  ;;  %v1658_v52 = vld [vmem:[%s2978_s18 + $0x1d0] sm:$0xff] }
  0xea   : > { %1369 = vxpose.xlu0.b32.cont [11/16] (narrow) %v1273_v53, 8  ;;  %v1642_v53 = vld [vmem:[%s2978_s18 + $0x150] sm:$0xff] }
  0xed   : > { %1402 = vxpose.xlu1.b32.cont [12/16] (narrow) %v1290_v54, 8  ;;  %v1659_v54 = vld [vmem:[%s2978_s18 + $0x1d8] sm:$0xff] }
  0xee   : > { %1370 = vxpose.xlu0.b32.cont [12/16] (narrow) %v1274_v55, 8  ;;  %v1643_v55 = vld [vmem:[%s2978_s18 + $0x158] sm:$0xff] }
  0xf1   : > { %1403 = vxpose.xlu1.b32.cont [13/16] (narrow) %v1291_v56, 8  ;;  %v1660_v56 = vld [vmem:[%s2978_s18 + $0x1e0] sm:$0xff] }
  0xf2   : > { %1371 = vxpose.xlu0.b32.cont [13/16] (narrow) %v1275_v57, 8  ;;  %v1644_v57 = vld [vmem:[%s2978_s18 + $0x160] sm:$0xff] }
  0xf5   : > { %1404 = vxpose.xlu1.b32.cont [14/16] (narrow) %v1292_v58, 8  ;;  %v1661_v58 = vld [vmem:[%s2978_s18 + $0x1e8] sm:$0xff] }
  0xf6   : > { %1372 = vxpose.xlu0.b32.cont [14/16] (narrow) %v1276_v59, 8  ;;  %v1645_v59 = vld [vmem:[%s2978_s18 + $0x168] sm:$0xff] }
  0xf9   : > { %1405 = vxpose.xlu1.b32.cont [15/16] (narrow) %v1293_v60, 8 }
  0xfa   : > { %1373 = vxpose.xlu0.b32.cont [15/16] (narrow) %v1277_v61, 8 }
  0xfd   : > { %1406 = vxpose.xlu1.b32.end [16/16] (narrow) %v1294_v62, 8  ;;  %v1662_v62 = vld [vmem:[%s2978_s18 + $0x1f0] sm:$0xff] }
  0xfe   : > { %1374 = vxpose.xlu0.b32.end [16/16] (narrow) %v1278_v63, 8  ;;  %v1646_v63 = vld [vmem:[%s2978_s18 + $0x170] sm:$0xff] }
 0x101   : > { %1696 = vxpose.xlu1.b32.start [1/16] (narrow) %v1616_v0, 8  ;;  %v3041_v60 = vpop.trf.xlu1 }
 0x102   : > { %1664 = vxpose.xlu0.b32.start [1/16] (narrow) %v1600_v1, 8  ;;  %v3043_v61 = vpop.trf.xlu0  ;;  %v1429_v0 = vrot.slane %v3041_v60, 4 }
 0x103   : > { %v1423_v1 = vrot.slane %v3043_v61, 4 }
 0x105   : > { %1697 = vxpose.xlu1.b32.cont [2/16] (narrow) %v1617_v2, 8  ;;  %v1495_v2 = vlaneseq }
 0x106   : > { %1665 = vxpose.xlu0.b32.cont [2/16] (narrow) %v1601_v3, 8  ;;  %v2413_v3 = vmov 1966171168  }
 0x109   : > { %1698 = vxpose.xlu1.b32.cont [3/16] (narrow) %v1618_v4, 8  ;;  %v1498_v4 = vunpack.c.l.s4 %v2413_v3  ;;  %v1845_v3 = vld [vmem:[%s3074_s14 + $0x1a8] sm:$0xff] }
 0x10a   : > { %1666 = vxpose.xlu0.b32.cont [3/16] (narrow) %v1602_v5, 8  ;;  %v1430_v5 = vmax.f32 %v3041_v60, %v1429_v0 }
 0x10d   : > { %1699 = vxpose.xlu1.b32.cont [4/16] (narrow) %v1619_v6, 8  ;;  %v1424_v6 = vmax.f32 %v3043_v61, %v1423_v1 }
 0x10e   : > { %1667 = vxpose.xlu0.b32.cont [4/16] (narrow) %v1603_v7, 8 }
 0x111   : > { %1700 = vxpose.xlu1.b32.cont [5/16] (narrow) %v1620_v8, 8 }
 0x112   : > { %1668 = vxpose.xlu0.b32.cont [5/16] (narrow) %v1604_v9, 8  ;;  %v1663_v9 = vld [vmem:[%s2978_s18 + $0x1f8] sm:$0xff] }
 0x115   : > { %1701 = vxpose.xlu1.b32.cont [6/16] (narrow) %v1621_v10, 8  ;;  %v1647_v10 = vld [vmem:[%s2978_s18 + $0x178] sm:$0xff] }
 0x116   : > { %1669 = vxpose.xlu0.b32.cont [6/16] (narrow) %v1605_v11, 8  ;;  %v1431_v11 = vrot.slane %v1430_v5, 2 }
 0x119   : > { %1702 = vxpose.xlu1.b32.cont [7/16] (narrow) %v1622_v12, 8  ;;  %v1425_v12 = vrot.slane %v1424_v6, 2 }
 0x11a   : > { %1670 = vxpose.xlu0.b32.cont [7/16] (narrow) %v1606_v13, 8 }
 0x11d   : > { %1703 = vxpose.xlu1.b32.cont [8/16] (narrow) %v1623_v14, 8  ;;  %v3066_v14 = vshrl.u32 %v1495_v2, 7 }
 0x11e   : > { %1671 = vxpose.xlu0.b32.cont [8/16] (narrow) %v1607_v15, 8 }
 0x121   : > { %1704 = vxpose.xlu1.b32.cont [9/16] (narrow) %v1624_v16, 8  ;;  %v3069_v16 = vld [vmem:[%s1206_s13] sm:$0xf] }
 0x122   : > { %1672 = vxpose.xlu0.b32.cont [9/16] (narrow) %v1608_v17, 8  ;;  %v1499_v17 = vunpack.c.0.s8 %v1498_v4  ;;  %vm1226_vm0 = vcmp.gt.s32.totalorder %v3069_v16, 0  ;;  %v1829_v4 = vld [vmem:[%s3074_s14 + $0x128] sm:$0xff] }
 0x125   : > { %1705 = vxpose.xlu1.b32.cont [10/16] (narrow) %v1625_v18, 8  ;;  %v1432_v18 = vmax.f32 %v1430_v5, %v1431_v11 }
 0x126   : > { %1673 = vxpose.xlu0.b32.cont [10/16] (narrow) %v1609_v19, 8  ;;  %v1426_v19 = vmax.f32 %v1424_v6, %v1425_v12  ;;  %v2414_v6 = vmov 0.0  }
 0x129   : > { %1706 = vxpose.xlu1.b32.cont [11/16] (narrow) %v1626_v20, 8 }
 0x12a   : > { %1674 = vxpose.xlu0.b32.cont [11/16] (narrow) %v1610_v21, 8 }
 0x12d   : > { %1707 = vxpose.xlu1.b32.cont [12/16] (narrow) %v1627_v22, 8  ;;  %v1840_v22 = vld [vmem:[%s3074_s14 + $0x180] sm:$0xff] }
 0x12e   : > { %1675 = vxpose.xlu0.b32.cont [12/16] (narrow) %v1611_v23, 8  ;;  %v1824_v23 = vld [vmem:[%s3074_s14 + $0x100] sm:$0xff] }
 0x131   : > { %1708 = vxpose.xlu1.b32.cont [13/16] (narrow) %v1628_v24, 8  ;;  %v1433_v24 = vrot.slane %v1432_v18, 1 }
 0x132   : > { %1676 = vxpose.xlu0.b32.cont [13/16] (narrow) %v1612_v25, 8  ;;  %v1427_v25 = vrot.slane %v1426_v19, 1 }
 0x135   : > { %1709 = vxpose.xlu1.b32.cont [14/16] (narrow) %v1629_v26, 8 }
 0x136   : > { %1677 = vxpose.xlu0.b32.cont [14/16] (narrow) %v1613_v27, 8 }
 0x139   : > { %1710 = vxpose.xlu1.b32.cont [15/16] (narrow) %v1630_v28, 8  ;;  %v1502_v28 = vsub.s32 %v1499_v17, %v3066_v14 }
 0x13a   : > { %1678 = vxpose.xlu0.b32.cont [15/16] (narrow) %v1614_v29, 8  ;;  %v3080_v29 = vmax.f32 %v1432_v18, %v1433_v24 }
 0x13d   : > { %1711 = vxpose.xlu1.b32.end [16/16] (narrow) %v1631_v30, 8  ;;  %v3082_v30 = vmax.f32 %v1426_v19, %v1427_v25  ;;  %v1846_v19 = vld [vmem:[%s3074_s14 + $0x1b0] sm:$0xff] }
 0x13e   : > { %1679 = vxpose.xlu0.b32.end [16/16] (narrow) %v1615_v31, 8 }
 0x141   : > { %1760 = vxpose.xlu1.b32.start [1/16] (narrow) %v1648_v32, 8  ;;  %v3053_v7 = vpop.trf.xlu1  ;;  %v1230_v32 = vsel %vm1226_vm0, %v3069_v16, 0  ;;  %v1811_v16 = vld [vmem:[%s3074_s14 + $0x98] sm:$0xff] }
 0x142   : > { %1728 = vxpose.xlu0.b32.start [1/16] (narrow) %v1632_v33, 8  ;;  %v3055_v8 = vpop.trf.xlu0  ;;  %v1441_v13 = vrot.slane %v3053_v7, 4  ;;  %v1841_v33 = vld [vmem:[%s3074_s14 + $0x188] sm:$0xff] }
 0x143   : > { %v1435_v15 = vrot.slane %v3055_v8, 4 }
 0x144   : > { %v1442_v20 = vmax.f32 %v3053_v7, %v1441_v13 }
 0x145   : > { %1761 = vxpose.xlu1.b32.cont [2/16] (narrow) %v1649_v34, 8  ;;  %v1436_v21 = vmax.f32 %v3055_v8, %v1435_v15  ;;  %v1825_v34 = vld [vmem:[%s3074_s14 + $0x108] sm:$0xff] }
 0x146   : > { %1729 = vxpose.xlu0.b32.cont [2/16] (narrow) %v1633_v35, 8  ;;  %v1443_v26 = vrot.slane %v1442_v20, 2  ;;  %v1448_v35 = vsub.f32 %v3041_v60, %v3080_v29 }
 0x147   : > { %v1437_v27 = vrot.slane %v1436_v21, 2 }
 0x148   : > { %v1444_v31 = vmax.f32 %v1442_v20, %v1443_v26  ;;  %v1830_v20 = vld [vmem:[%s3074_s14 + $0x130] sm:$0xff] }
 0x149   : > { %1762 = vxpose.xlu1.b32.cont [3/16] (narrow) %v1650_v36, 8  ;;  %v1447_v36 = vsub.f32 %v3043_v61, %v3082_v30 }
 0x14a   : > { %1730 = vxpose.xlu0.b32.cont [3/16] (narrow) %v1634_v37, 8  ;;  %v1445_v37 = vrot.slane %v1444_v31, 1 }
 0x14d   : > { %1763 = vxpose.xlu1.b32.cont [4/16] (narrow) %v1651_v38, 8  ;;  %v1438_v38 = vmax.f32 %v1436_v21, %v1437_v27 }
 0x14e   : > { %1731 = vxpose.xlu0.b32.cont [4/16] (narrow) %v1635_v39, 8  ;;  %v1503_v39 = vrot.slane %v1230_v32, %v1502_v28 }
 0x151   : > { %1764 = vxpose.xlu1.b32.cont [5/16] (narrow) %v1652_v40, 8  ;;  %v1453_v40 = vmul.f32 1.442695, %v1448_v35  ;;  %v1847_v35 = vld [vmem:[%s3074_s14 + $0x1b8] sm:$0xff] }
 0x152   : > { %1732 = vxpose.xlu0.b32.cont [5/16] (narrow) %v1636_v41, 8  ;;  %v1451_v41 = vmul.f32 1.442695, %v1447_v36  ;;  %v1831_v36 = vld [vmem:[%s3074_s14 + $0x138] sm:$0xff] }
 0x153   : > { %2357 = vpow2.f32 %v1453_v40 }
 0x154   : > { %2359 = vpow2.f32 %v1451_v41 }
 0x155   : > { %1765 = vxpose.xlu1.b32.cont [6/16] (narrow) %v1653_v42, 8  ;;  %v1439_v42 = vrot.slane %v1438_v38, 1 }
 0x156   : > { %1733 = vxpose.xlu0.b32.cont [6/16] (narrow) %v1637_v43, 8  ;;  %v1842_v43 = vld [vmem:[%s3074_s14 + $0x190] sm:$0xff] }
 0x159   : > { %1766 = vxpose.xlu1.b32.cont [7/16] (narrow) %v1654_v44, 8  ;;  %v1826_v44 = vld [vmem:[%s3074_s14 + $0x110] sm:$0xff] }
 0x15a   : > { %1734 = vxpose.xlu0.b32.cont [7/16] (narrow) %v1638_v45, 8  ;;  %v3095_v45 = vmax.f32 %v1444_v31, %v1445_v37 }
 0x15d   : > { %1767 = vxpose.xlu1.b32.cont [8/16] (narrow) %v1655_v46, 8  ;;  %v1511_v46 = vsub.s32 1, %v3066_v14  ;;  %v2358_v0 = vpop.eup %2357 }
 0x15e   : > { %1735 = vxpose.xlu0.b32.cont [8/16] (narrow) %v1639_v47, 8  ;;  %v1504_v47 = vcombine.high %v1503_v39, %v1503_v39  ;;  %v2360_v1 = vpop.eup %2359  ;;  %v1465_v2 = vrot.slane %v2358_v0, 4 }
 0x15f   : > { %v1459_v5 = vrot.slane %v2360_v1, 4 }
 0x161   : > { %1768 = vxpose.xlu1.b32.cont [9/16] (narrow) %v1656_v48, 8  ;;  %v1450_v48 = vsub.f32 %v3053_v7, %v3095_v45  ;;  %v1460_v13 = vadd.f32 %v2360_v1, %v1459_v5  ;;  %v1850_v1 = vld [vmem:[%s3074_s14 + $0x1d0] sm:$0xff] }
 0x162   : > { %1736 = vxpose.xlu0.b32.cont [9/16] (narrow) %v1640_v49, 8  ;;  %v3100_v49 = vmax.f32 %v1438_v38, %v1439_v42 }
 0x165   : > { %1769 = vxpose.xlu1.b32.cont [10/16] (narrow) %v1657_v50, 8  ;;  %v1843_v50 = vld [vmem:[%s3074_s14 + $0x198] sm:$0xff] }
 0x166   : > { %1737 = vxpose.xlu0.b32.cont [10/16] (narrow) %v1641_v51, 8  ;;  %v1827_v51 = vld [vmem:[%s3074_s14 + $0x118] sm:$0xff] }
 0x169   : > { %1770 = vxpose.xlu1.b32.cont [11/16] (narrow) %v1658_v52, 8  ;;  %v1507_v52 = vsub.s32 0, %v3066_v14 }
 0x16a   : > { %1738 = vxpose.xlu0.b32.cont [11/16] (narrow) %v1642_v53, 8  ;;  %v1457_v53 = vmul.f32 1.442695, %v1450_v48 }
 0x16c   : > { %2361 = vpow2.f32 %v1457_v53 }
 0x16d   : > { %1771 = vxpose.xlu1.b32.cont [12/16] (narrow) %v1659_v54, 8  ;;  %v1449_v54 = vsub.f32 %v3055_v8, %v3100_v49 }
 0x16e   : > { %1739 = vxpose.xlu0.b32.cont [12/16] (narrow) %v1643_v55, 8  ;;  %v1512_v55 = vrot.slane %v1503_v39, %v1511_v46 }
 0x170   : > { %vm1522_vm1 = vcmp.eq.s32.totalorder %v3066_v14, %v1512_v55 }
 0x171   : > { %1772 = vxpose.xlu1.b32.cont [13/16] (narrow) %v1660_v56, 8  ;;  %v1520_v56 = vrot.slane %v1504_v47, %v1511_v46  ;;  %v1832_v46 = vld [vmem:[%s3074_s14 + $0x140] sm:$0xff] }
 0x172   : > { %1740 = vxpose.xlu0.b32.cont [13/16] (narrow) %v1644_v57, 8  ;;  %v1455_v57 = vmul.f32 1.442695, %v1449_v54 }
 0x173   : > { %vm1524_vm2 = vcmp.eq.s32.totalorder %v3066_v14, %v1520_v56  ;;  %v1849_v56 = vld [vmem:[%s3074_s14 + $0x1c8] sm:$0xff] }
 0x174   : > { %2363 = vpow2.f32 %v1455_v57  ;;  %v2302_v11 = vsel %vm1524_vm2, 1.0, %v2414_v6  ;;  %v1833_v57 = vld [vmem:[%s3074_s14 + $0x148] sm:$0xff] }
 0x175   : > { %1773 = vxpose.xlu1.b32.cont [14/16] (narrow) %v1661_v58, 8  ;;  %v1508_v58 = vrot.slane %v1503_v39, %v1507_v52 }
 0x176   : > { %1741 = vxpose.xlu0.b32.cont [14/16] (narrow) %v1645_v59, 8  ;;  %v1844_v59 = vld [vmem:[%s3074_s14 + $0x1a0] sm:$0xff]  ;;  %v2362_v18 = vpop.eup %2361 }
 0x177   : > { %vm1521_vm3 = vcmp.eq.s32.totalorder %v3066_v14, %v1508_v58  ;;  %v1477_v26 = vrot.slane %v2362_v18, 4 }
 0x178   : > { %v2299_v12 = vsel %vm1521_vm3, 1.0, %v2414_v6 }
 0x179   : > { %1774 = vxpose.xlu1.b32.cont [15/16] (narrow) %v1662_v62, 8  ;;  %v1828_v62 = vld [vmem:[%s3074_s14 + $0x120] sm:$0xff]  ;;  %v1533_v25 = vmul.f32 %v2299_v12, %v3043_v61  ;;  %v1851_v12 = vld [vmem:[%s3074_s14 + $0x1d8] sm:$0xff] }
 0x17a   : > { %1742 = vxpose.xlu0.b32.cont [15/16] (narrow) %v1646_v63, 8  ;;  %v1516_v63 = vrot.slane %v1504_v47, %v1507_v52 }
 0x17b   : > { %v1537_v39 = vrot.slane %v1533_v25, 4 }
 0x17c   : > { %vm1523_vm4 = vcmp.eq.s32.totalorder %v3066_v14, %v1516_v63 }
 0x17d   : > { %1775 = vxpose.xlu1.b32.end [16/16] (narrow) %v1663_v9, 8  ;;  %v2300_v9 = vsel %vm1522_vm1, 1.0, %v2414_v6  ;;  %v2301_v17 = vsel %vm1523_vm4, 1.0, %v2414_v6 }
 0x17e   : > { %1743 = vxpose.xlu0.b32.end [16/16] (narrow) %v1647_v10, 8  ;;  %v1466_v10 = vadd.f32 %v2358_v0, %v1465_v2  ;;  %v1534_v21 = vmul.f32 %v2300_v9, %v3041_v60  ;;  %v2364_v27 = vpop.eup %2363  ;;  %v1535_v31 = vmul.f32 %v2301_v17, %v3055_v8  ;;  %v1834_v2 = vld [vmem:[%s3074_s14 + $0x150] sm:$0xff] }
 0x180   : > { %v1467_v15 = vrot.slane %v1466_v10, 2  ;;  %v1543_v60 = vrot.slane %v1534_v21, 4  ;;  %v1549_v42 = vrot.slane %v1535_v31, 4 }
 0x181   : > { %1952 = vxpose.xlu1.b32.start [1/16] (narrow) %v1840_v22, 8  ;;  %v1461_v22 = vrot.slane %v1460_v13, 2 }
 0x182   : > { %1920 = vxpose.xlu0.b32.start [1/16] (narrow) %v1824_v23, 8  ;;  %v1536_v23 = vmul.f32 %v2302_v11, %v3053_v7  ;;  %v1468_v24 = vadd.f32 %v1467_v15, %v1466_v10  ;;  %v1544_v48 = vadd.f32 %v1543_v60, %v1534_v21  ;;  %v1550_v53 = vadd.f32 %v1549_v42, %v1535_v31 }
 0x183   : > { %v1462_v28 = vadd.f32 %v1461_v22, %v1460_v13  ;;  %v1835_v13 = vld [vmem:[%s3074_s14 + $0x158] sm:$0xff]  ;;  %v2415_v21 = vmov 1983009808  }
 0x184   : > { %v1469_v32 = vrot.slane %v1468_v24, 1  ;;  %v1555_v7 = vrot.slane %v1536_v23, 4  ;;  %v1551_v0 = vrot.slane %v1550_v53, 2  ;;  %v1571_v22 = vunpack.c.l.s4 %v2415_v21  ;;  %v1820_v21 = vld [vmem:[%s3074_s14 + $0xe0] sm:$0xff] }
 0x185   : > { %1953 = vxpose.xlu1.b32.cont [2/16] (narrow) %v1841_v33, 8  ;;  %v1478_v33 = vadd.f32 %v2362_v18, %v1477_v26  ;;  %v1463_v37 = vrot.slane %v1462_v28, 1  ;;  %v1836_v26 = vld [vmem:[%s3074_s14 + $0x160] sm:$0xff] }
 0x186   : > { %1921 = vxpose.xlu0.b32.cont [2/16] (narrow) %v1825_v34, 8  ;;  %v1471_v34 = vrot.slane %v2364_v27, 4  ;;  %v1470_v38 = vadd.f32 %v1469_v32, %v1468_v24  ;;  %v1556_v47 = vadd.f32 %v1555_v7, %v1536_v23  ;;  %v1552_v11 = vadd.f32 %v1551_v0, %v1550_v53  ;;  %v1812_v0 = vld [vmem:[%s3074_s14 + $0xa0] sm:$0xff] }
 0x187   : > { %v1479_v61 = vrot.slane %v1478_v33, 2  ;;  %v1464_v41 = vadd.f32 %v1463_v37, %v1462_v28  ;;  %v1572_v60 = vunpack.c.0.s8 %v1571_v22  ;;  %v1804_v22 = vld [vmem:[%s3074_s14 + $0x60] sm:$0xff] }
 0x188   : > { %v1472_v40 = vadd.f32 %v2364_v27, %v1471_v34  ;;  %2365 = vlog2.f32 %v1470_v38  ;;  %v1557_v58 = vrot.slane %v1556_v47, 2  ;;  %v1553_v23 = vrot.slane %v1552_v11, 1  ;;  %v1853_v38 = vld [vmem:[%s3074_s14 + $0x1e8] sm:$0xff] }
 0x189   : > { %1954 = vxpose.xlu1.b32.cont [3/16] (narrow) %v1842_v43, 8  ;;  %v1480_v8 = vadd.f32 %v1479_v61, %v1478_v33  ;;  %2367 = vlog2.f32 %v1464_v41 }
 0x18a   : > { %1922 = vxpose.xlu0.b32.cont [3/16] (narrow) %v1826_v44, 8  ;;  %v1473_v43 = vrot.slane %v1472_v40, 2  ;;  %v1848_v44 = vld [vmem:[%s3074_s14 + $0x1c0] sm:$0xff]  ;;  %v1554_v7 = vadd.f32 %v1553_v23, %v1552_v11  ;;  %v1821_v23 = vld [vmem:[%s3074_s14 + $0xe8] sm:$0xff] }
 0x18b   : > { %v1816_v11 = vld [vmem:[%s3074_s14 + $0xc0] sm:$0xff] }
 0x18c   : > { %v1474_v52 = vadd.f32 %v1473_v43, %v1472_v40 }
 0x18d   : > { %1955 = vxpose.xlu1.b32.cont [4/16] (narrow) %v1843_v50, 8  ;;  %v1538_v50 = vadd.f32 %v1537_v39, %v1533_v25  ;;  %v1852_v25 = vld [vmem:[%s3074_s14 + $0x1e0] sm:$0xff]  ;;  %v1837_v39 = vld [vmem:[%s3074_s14 + $0x168] sm:$0xff] }
 0x18e   : > { %1923 = vxpose.xlu0.b32.cont [4/16] (narrow) %v1827_v51, 8  ;;  %v1481_v51 = vrot.slane %v1480_v8, 1  ;;  %v1475_v55 = vrot.slane %v1474_v52, 1 }
 0x190   : > { %v1482_v54 = vadd.f32 %v1481_v51, %v1480_v8  ;;  %v1476_v63 = vadd.f32 %v1475_v55, %v1474_v52  ;;  %v1838_v8 = vld [vmem:[%s3074_s14 + $0x170] sm:$0xff]  ;;  %v1808_v51 = vld [vmem:[%s3074_s14 + $0x80] sm:$0xff]  ;;  %v2298_v55 = vsel %vm1226_vm0, 1.0, %v2414_v6  ;;  %v1795_v6 = vld [vmem:[%s3074_s14 + $0x18] sm:$0xff] }
 0x191   : > { %1956 = vxpose.xlu1.b32.cont [5/16] (narrow) %v1844_v59, 8  ;;  %v1545_v59 = vrot.slane %v1544_v48, 2  ;;  %v1792_v52 = vld [vmem:[%s3074_s14] sm:$0xff] }
 0x192   : > { %1924 = vxpose.xlu0.b32.cont [5/16] (narrow) %v1828_v62, 8  ;;  %v1539_v62 = vrot.slane %v1538_v50, 2  ;;  %2369 = vlog2.f32 %v1482_v54 }
 0x193   : > { %2371 = vlog2.f32 %v1476_v63  ;;  %v1546_v5 = vadd.f32 %v1545_v59, %v1544_v48  ;;  %v1839_v48 = vld [vmem:[%s3074_s14 + $0x178] sm:$0xff]  ;;  %v1793_v59 = vld [vmem:[%s3074_s14 + $0x8] sm:$0xff]  ;;  %v1794_v63 = vld [vmem:[%s3074_s14 + $0x10] sm:$0xff] }
 0x194   : > { %v1540_v9 = vadd.f32 %v1539_v62, %v1538_v50  ;;  %v1810_v62 = vld [vmem:[%s3074_s14 + $0x90] sm:$0xff] }
 0x195   : > { %1957 = vxpose.xlu1.b32.cont [6/16] (narrow) %v1845_v3, 8  ;;  %v1558_v3 = vadd.f32 %v1557_v58, %v1556_v47  ;;  %v1547_v18 = vrot.slane %v1546_v5, 1  ;;  %v1855_v47 = vld [vmem:[%s3074_s14 + $0x1f8] sm:$0xff]  ;;  %v1809_v58 = vld [vmem:[%s3074_s14 + $0x88] sm:$0xff] }
 0x196   : > { %1925 = vxpose.xlu0.b32.cont [6/16] (narrow) %v1829_v4, 8  ;;  %v2366_v4 = vpop.eup %2365 }
 0x197   : > { %v2368_v10 = vpop.eup %2367  ;;  %v1559_v15 = vrot.slane %v1558_v3, 1  ;;  %v1486_v17 = vmul.f32 0.6931472, %v2366_v4  ;;  %v1548_v33 = vadd.f32 %v1547_v18, %v1546_v5  ;;  %v1814_v4 = vld [vmem:[%s3074_s14 + $0xb0] sm:$0xff] }
 0x198   : > { %v1798_v5 = vld [vmem:[%s3074_s14 + $0x30] sm:$0xff] }
 0x199   : > { %1958 = vxpose.xlu1.b32.cont [7/16] (narrow) %v1846_v19, 8  ;;  %v1484_v19 = vmul.f32 0.6931472, %v2368_v10  ;;  %v1560_v28 = vadd.f32 %v1559_v15, %v1558_v3  ;;  %v1492_v32 = vadd.f32 %v1486_v17, %v3080_v29  ;;  %v1797_v3 = vld [vmem:[%s3074_s14 + $0x28] sm:$0xff]  ;;  %v1799_v10 = vld [vmem:[%s3074_s14 + $0x38] sm:$0xff]  ;;  %v1818_v17 = vld [vmem:[%s3074_s14 + $0xd0] sm:$0xff] }
 0x19a   : > { %1926 = vxpose.xlu0.b32.cont [7/16] (narrow) %v1830_v20, 8  ;;  %v1541_v20 = vrot.slane %v1540_v9, 1  ;;  %v1801_v15 = vld [vmem:[%s3074_s14 + $0x48] sm:$0xff]  ;;  %v1802_v18 = vld [vmem:[%s3074_s14 + $0x50] sm:$0xff] }
 0x19b   : > { %v1491_v34 = vadd.f32 %v1484_v19, %v3082_v30  ;;  %v1562_v40 = vsub.f32 %v1492_v32, %v1548_v33  ;;  %v1575_v30 = vsub.s32 %v1572_v60, %v3066_v14  ;;  %v1819_v19 = vld [vmem:[%s3074_s14 + $0xd8] sm:$0xff]  ;;  %v1680_v32 = vpop.trf.xlu0 }
 0x19c   : > { %v2370_v24 = vpop.eup %2369 }
 0x19d   : > { %1959 = vxpose.xlu1.b32.cont [8/16] (narrow) %v1847_v35, 8  ;;  %v1490_v27 = vmul.f32 0.6931472, %v2370_v24  ;;  %v2372_v31 = vpop.eup %2371  ;;  %v1542_v35 = vadd.f32 %v1541_v20, %v1540_v9  ;;  %v1815_v9 = vld [vmem:[%s3074_s14 + $0xb8] sm:$0xff]  ;;  %v1805_v24 = vld [vmem:[%s3074_s14 + $0x68] sm:$0xff] }
 0x19e   : > { %1927 = vxpose.xlu0.b32.cont [8/16] (narrow) %v1831_v36, 8  ;;  %v1488_v37 = vmul.f32 0.6931472, %v2372_v31  ;;  %v1803_v20 = vld [vmem:[%s3074_s14 + $0x58] sm:$0xff]  ;;  %v1712_v31 = vpop.trf.xlu1 }
 0x19f   : > { %v1494_v36 = vadd.f32 %v1490_v27, %v3095_v45  ;;  %v1561_v41 = vsub.f32 %v1491_v34, %v1542_v35  ;;  %v1854_v45 = vld [vmem:[%s3074_s14 + $0x1f0] sm:$0xff]  ;;  %v1823_v27 = vld [vmem:[%s3074_s14 + $0xf8] sm:$0xff] }
 0x1a0   : > { %v1493_v29 = vadd.f32 %v1488_v37, %v3100_v49 }
 0x1a1   : > { %1960 = vxpose.xlu1.b32.cont [9/16] (narrow) %v1848_v44, 8  ;;  %v1564_v61 = vsub.f32 %v1494_v36, %v1560_v28  ;;  %v1569_v44 = vcombine.low %v1561_v41, %v1562_v40  ;;  %v1807_v28 = vld [vmem:[%s3074_s14 + $0x78] sm:$0xff] }
 0x1a2   : > { %1928 = vxpose.xlu0.b32.cont [9/16] (narrow) %v1832_v46, 8  ;;  %v1563_v42 = vsub.f32 %v1493_v29, %v1554_v7 }
 0x1a3   : > { %v1576_v49 = vrot.slane %v1569_v44, %v1575_v30 }
 0x1a4   : > { %v1577_v43 = vcombine.low %v1563_v42, %v1564_v61 }
 0x1a5   : > { %1961 = vxpose.xlu1.b32.cont [10/16] (narrow) %v1849_v56, 8 }
 0x1a6   : > { %1929 = vxpose.xlu0.b32.cont [10/16] (narrow) %v1833_v57, 8  ;;  %v1584_v46 = vrot.slane %v1577_v43, %v1575_v30  ;;  %v3159_v57 = vrot.slane %v2298_v55, %v1575_v30 }
 0x1a8   : > { %v1589_v50 = vrot.slane %v1584_v46, 7 }
 0x1a9   : > { %1962 = vxpose.xlu1.b32.cont [11/16] (narrow) %v1850_v1, 8  ;;  %v1796_v1 = vld [vmem:[%s3074_s14 + $0x20] sm:$0xff] }
 0x1aa   : > { %1930 = vxpose.xlu0.b32.cont [11/16] (narrow) %v1834_v2, 8  ;;  %v1591_v14 = vsel %vm1590_vm5, %v1589_v50, %v1576_v49  ;;  %v1813_v2 = vld [vmem:[%s3074_s14 + $0xa8] sm:$0xff] }
 0x1ab   : > { %v1593_v53 = vsel %vm1592_vm6, %v1589_v50, %v1591_v14 }
 0x1ac   : > { %v1595_v54 = vsel %vm1594_vm7, %v1589_v50, %v1593_v53 }
 0x1ad   : > { %1963 = vxpose.xlu1.b32.cont [12/16] (narrow) %v1851_v12, 8  ;;  %v1597_v56 = vsel %vm1596_vm8, %v1589_v50, %v1595_v54  ;;  %v1800_v12 = vld [vmem:[%s3074_s14 + $0x40] sm:$0xff] }
 0x1ae   : > { %1931 = vxpose.xlu0.b32.cont [12/16] (narrow) %v1835_v13, 8  ;;  %1599 = vst [vmem:[%s1216_s17] sm:$0xf] %v1597_v56  ;;  %v1817_v13 = vld [vmem:[%s3074_s14 + $0xc8] sm:$0xff] }
 0x1b1   : > { %1964 = vxpose.xlu1.b32.cont [13/16] (narrow) %v1852_v25, 8  ;;  %v1822_v25 = vld [vmem:[%s3074_s14 + $0xf0] sm:$0xff] }
 0x1b2   : > { %1932 = vxpose.xlu0.b32.cont [13/16] (narrow) %v1836_v26, 8  ;;  %v1806_v26 = vld [vmem:[%s3074_s14 + $0x70] sm:$0xff] }
 0x1b5   : > { %1965 = vxpose.xlu1.b32.cont [14/16] (narrow) %v1853_v38, 8 }
 0x1b6   : > { %1933 = vxpose.xlu0.b32.cont [14/16] (narrow) %v1837_v39, 8 }
 0x1b9   : > { %1966 = vxpose.xlu1.b32.cont [15/16] (narrow) %v1854_v45, 8 }
 0x1ba   : > { %1934 = vxpose.xlu0.b32.cont [15/16] (narrow) %v1838_v8, 8 }
 0x1bd   : > { %1967 = vxpose.xlu1.b32.end [16/16] (narrow) %v1855_v47, 8 }
 0x1be   : > { %1935 = vxpose.xlu0.b32.end [16/16] (narrow) %v1839_v48, 8 }
 0x1c1   : > { %1888 = vxpose.xlu1.b32.start [1/16] (narrow) %v1808_v51, 8  ;;  %v1776_v33 = vpop.trf.xlu1 }
 0x1c2   : > { %1856 = vxpose.xlu0.b32.start [1/16] (narrow) %v1792_v52, 8  ;;  %v1744_v34 = vpop.trf.xlu0 }
 0x1c5   : > { %1889 = vxpose.xlu1.b32.cont [2/16] (narrow) %v1809_v58, 8 }
 0x1c6   : > { %1857 = vxpose.xlu0.b32.cont [2/16] (narrow) %v1793_v59, 8 }
 0x1c9   : > { %1890 = vxpose.xlu1.b32.cont [3/16] (narrow) %v1810_v62, 8 }
 0x1ca   : > { %1858 = vxpose.xlu0.b32.cont [3/16] (narrow) %v1794_v63, 8 }
 0x1cd   : > { %1891 = vxpose.xlu1.b32.cont [4/16] (narrow) %v1811_v16, 8 }
 0x1ce   : > { %1859 = vxpose.xlu0.b32.cont [4/16] (narrow) %v1795_v6, 8 }
 0x1d1   : > { %1892 = vxpose.xlu1.b32.cont [5/16] (narrow) %v1812_v0, 8 }
 0x1d2   : > { %1860 = vxpose.xlu0.b32.cont [5/16] (narrow) %v1796_v1, 8 }
 0x1d5   : > { %1893 = vxpose.xlu1.b32.cont [6/16] (narrow) %v1813_v2, 8 }
 0x1d6   : > { %1861 = vxpose.xlu0.b32.cont [6/16] (narrow) %v1797_v3, 8 }
 0x1d9   : > { %1894 = vxpose.xlu1.b32.cont [7/16] (narrow) %v1814_v4, 8 }
 0x1da   : > { %1862 = vxpose.xlu0.b32.cont [7/16] (narrow) %v1798_v5, 8 }
 0x1dd   : > { %1895 = vxpose.xlu1.b32.cont [8/16] (narrow) %v1815_v9, 8 }
 0x1de   : > { %1863 = vxpose.xlu0.b32.cont [8/16] (narrow) %v1799_v10, 8  ;;  %v2049_v10 = vcombine.high %v3159_v57, %v3159_v57 }
 0x1e1   : > { %1896 = vxpose.xlu1.b32.cont [9/16] (narrow) %v1816_v11, 8 }
 0x1e2   : > { %1864 = vxpose.xlu0.b32.cont [9/16] (narrow) %v1800_v12, 8 }
 0x1e5   : > { %1897 = vxpose.xlu1.b32.cont [10/16] (narrow) %v1817_v13, 8 }
 0x1e6   : > { %1865 = vxpose.xlu0.b32.cont [10/16] (narrow) %v1801_v15, 8 }
 0x1e9   : > { %1898 = vxpose.xlu1.b32.cont [11/16] (narrow) %v1818_v17, 8 }
 0x1ea   : > { %1866 = vxpose.xlu0.b32.cont [11/16] (narrow) %v1802_v18, 8 }
 0x1ed   : > { %1899 = vxpose.xlu1.b32.cont [12/16] (narrow) %v1819_v19, 8  ;;  %v2051_v19 = vrot.slane %v2049_v10, 1 }
 0x1ee   : > { %1867 = vxpose.xlu0.b32.cont [12/16] (narrow) %v1803_v20, 8 }
 0x1f1   : > { %1900 = vxpose.xlu1.b32.cont [13/16] (narrow) %v1820_v21, 8 }
 0x1f2   : > { %1868 = vxpose.xlu0.b32.cont [13/16] (narrow) %v1804_v22, 8  ;;  %v2050_v22 = vrot.slane %v3159_v57, 1 }
 0x1f5   : > { %1901 = vxpose.xlu1.b32.cont [14/16] (narrow) %v1821_v23, 8 }
 0x1f6   : > { %1869 = vxpose.xlu0.b32.cont [14/16] (narrow) %v1805_v24, 8 }
 0x1f9   : > { %1902 = vxpose.xlu1.b32.cont [15/16] (narrow) %v1822_v25, 8 }
 0x1fa   : > { %1870 = vxpose.xlu0.b32.cont [15/16] (narrow) %v1806_v26, 8 }
 0x1fd   : > { %1903 = vxpose.xlu1.b32.end [16/16] (narrow) %v1823_v27, 8 }
 0x1fe   : > { %1871 = vxpose.xlu0.b32.end [16/16] (narrow) %v1807_v28, 8 }
 0x201   : > { %v1968_v35 = vpop.trf.xlu1 }
 0x202   : > { %v1936_v36 = vpop.trf.xlu0  ;;  %v1987_v60 = vsub.f32 %v1776_v33, %v1968_v35 }
 0x203   : > { %v1986_v37 = vsub.f32 %v1744_v34, %v1936_v36 }
 0x204   : > { %v1991_v7 = vand.u32 2147483647, %v1987_v60  ;;  %v1999_v38 = vmul.f32 0.5, %v1987_v60 }
 0x205   : > { %v1990_v39 = vand.u32 2147483647, %v1986_v37  ;;  %v1998_v61 = vmul.f32 0.5, %v1986_v37 }
 0x206   : > { %v2003_v29 = vmul.f32 %v1999_v38, %v1987_v60  ;;  %v2306_v40 = vadd.f32 -0.5, %v1991_v7  ;;  %vm1995_vm9 = vcmp.lt.f32.partialorder %v1991_v7, 1.0 }
 0x207   : > { %v2002_v41 = vmul.f32 %v1998_v61, %v1986_v37  ;;  %v2305_v30 = vadd.f32 -0.5, %v1990_v39  ;;  %vm1994_vm10 = vcmp.lt.f32.partialorder %v1990_v39, 1.0 }
 0x208   : > { %v2011_v42 = vsel %vm1995_vm9, %v2003_v29, %v2306_v40 }
 0x209   : > { %v2010_v45 = vsel %vm1994_vm10, %v2002_v41, %v2305_v30  ;;  %v2034_v8 = vsel %vm2012_vm11, %v2011_v42, 0.0 }
 0x20a   : > { %v2027_v43 = vsel %vm2012_vm11, %v2010_v45, 0.0  ;;  %v2035_v44 = vrot.slane %v2034_v8, 4 }
 0x20b   : > { %v2028_v46 = vrot.slane %v2027_v43, 4 }
 0x20c   : > { %v2036_v47 = vadd.f32 %v2035_v44, %v2034_v8 }
 0x20d   : > { %v2029_v48 = vadd.f32 %v2028_v46, %v2027_v43 }
 0x20e   : > { %v2037_v49 = vrot.slane %v2036_v47, 2 }
 0x20f   : > { %v2030_v53 = vrot.slane %v2029_v48, 2 }
 0x210   : > { %v2038_v59 = vadd.f32 %v2037_v49, %v2036_v47 }
 0x211   : > { %v2031_v0 = vadd.f32 %v2030_v53, %v2029_v48 }
 0x212   : > { %v2039_v9 = vrot.slane %v2038_v59, 1 }
 0x213   : > { %v2032_v12 = vrot.slane %v2031_v0, 1 }
 0x214   : > { %v2040_v18 = vadd.f32 %v2039_v9, %v2038_v59 }
 0x215   : > { %v2033_v21 = vadd.f32 %v2032_v12, %v2031_v0 }
 0x216   : > { %v2059_v26 = vmul.f32 %v2051_v19, %v2040_v18 }
 0x217   : > { %v2058_v28 = vmul.f32 %v2050_v22, %v2033_v21 }
 0x218   : > { %v2066_v34 = vrot.slane %v2059_v26, 7 }
 0x219   : > { %v2064_v36 = vrot.slane %v2058_v28, 7 }
 0x241   : > { %v1904_v50 = vpop.trf.xlu1 }
 0x242   : > { %v1872_v14 = vpop.trf.xlu0  ;;  %v1985_v51 = vsub.f32 %v1712_v31, %v1904_v50 }
 0x243   : > { %v1984_v52 = vsub.f32 %v1680_v32, %v1872_v14 }
 0x244   : > { %v1989_v54 = vand.u32 2147483647, %v1985_v51  ;;  %v1997_v55 = vmul.f32 0.5, %v1985_v51 }
 0x245   : > { %v1988_v56 = vand.u32 2147483647, %v1984_v52  ;;  %v1996_v58 = vmul.f32 0.5, %v1984_v52 }
 0x246   : > { %vm1993_vm12 = vcmp.lt.f32.partialorder %v1989_v54, 1.0  ;;  %v2001_v62 = vmul.f32 %v1997_v55, %v1985_v51  ;;  %v2304_v63 = vadd.f32 -0.5, %v1989_v54 }
 0x247   : > { %vm1992_vm13 = vcmp.lt.f32.partialorder %v1988_v56, 1.0  ;;  %v2000_v16 = vmul.f32 %v1996_v58, %v1984_v52  ;;  %v2303_v6 = vadd.f32 -0.5, %v1988_v56 }
 0x248   : > { %v2009_v1 = vsel %vm1993_vm12, %v2001_v62, %v2304_v63 }
 0x249   : > { %v2020_v2 = vsel %vm2012_vm11, %v2009_v1, 0.0  ;;  %v2008_v3 = vsel %vm1992_vm13, %v2000_v16, %v2303_v6 }
 0x24a   : > { %v2021_v4 = vrot.slane %v2020_v2, 4  ;;  %v2013_v5 = vsel %vm2012_vm11, %v2008_v3, 0.0 }
 0x24b   : > { %v2014_v11 = vrot.slane %v2013_v5, 4 }
 0x24c   : > { %v2022_v13 = vadd.f32 %v2021_v4, %v2020_v2 }
 0x24d   : > { %v2015_v15 = vadd.f32 %v2014_v11, %v2013_v5 }
 0x24e   : > { %v2023_v17 = vrot.slane %v2022_v13, 2 }
 0x24f   : > { %v2016_v20 = vrot.slane %v2015_v15, 2 }
 0x250   : > { %v2024_v23 = vadd.f32 %v2023_v17, %v2022_v13 }
 0x251   : > { %v2017_v24 = vadd.f32 %v2016_v20, %v2015_v15 }
 0x252   : > { %v2025_v25 = vrot.slane %v2024_v23, 1 }
 0x253   : > { %v2018_v27 = vrot.slane %v2017_v24, 1 }
 0x254   : > { %v2026_v31 = vadd.f32 %v2025_v25, %v2024_v23 }
 0x255   : > { %v2019_v32 = vadd.f32 %v2018_v27, %v2017_v24 }
 0x256   : > { %v2057_v33 = vmul.f32 %v2049_v10, %v2026_v31 }
 0x257   : > { %v2056_v35 = vmul.f32 %v3159_v57, %v2019_v32 }
 0x258   : > { %v2067_v60 = vsel %vm1590_vm5, %v2066_v34, %v2057_v33 }
 0x259   : > { %v2065_v37 = vsel %vm1590_vm5, %v2064_v36, %v2056_v35  ;;  %v2072_v7 = vsel %vm2070_vm14, %v2067_v60, 0.0 }
 0x25a   : > { %v2071_v38 = vsel %vm2070_vm14, %v2065_v37, 0.0 }
 0x25b   : > { %v2073_v39 = vadd.f32 %v2072_v7, %v2071_v38 }
 0x25d   : > { %2074 = vadd.xlane.f32.xlu0 %v2073_v39 }
 0x2ea   : > { %v2075_v61 = vpop.xlane.xlu0 %2074 }
 0x2eb   : > { %v2076_v29 = vrot.slane %v2075_v61, 4 }
 0x2ed   : > { %v2077_v40 = vadd.f32 %v2076_v29, %v2075_v61 }
 0x2ef   : > { %v2078_v41 = vrot.slane %v2077_v40, 2 }
 0x2f1   : > { %v2079_v30 = vadd.f32 %v2078_v41, %v2077_v40 }
 0x2f3   : > { %v2080_v42 = vrot.slane %v2079_v30, 1 }
 0x2f5   : > { %v2081_v45 = vadd.f32 %v2080_v42, %v2079_v30 }
 0x2f7   : > { %2312 = vpush %v2081_v45 }
 0x328   : > { %s2313_s29 = spop %2312 }
 0x329   : > { %v2083_v57 = vstv %s2313_s29 }
 0x32a   : > { %2085 = vst.msk [vmem:[%s1224_s28] sm:$0x1] %vm2084_vm15, %v2083_v57 }
 0x32b PF: > { %s16_s22 = sadd.s32 1, %s2411_s22   ;;  %s3228_s18 = smov %s2399_s19 }
 0x32c   : > { %p13_p11 = scmp.ge.s32.totalorder %s16_s22, 5   ;;  %s3229_s19 = smov %s2485_s27 }
 0x32d   : > { %s3230_s20 = smov %s2407_s21  ;;  %s3231_s21 = smov %s3233_s23 }
 0x32e   :  { %15 = sbr.rel (!%p13_p11) target bundleno = 3 (0x3), region = 216 }

</bundles_post_ra>
